<compile_context>
chip_gen: v6e
topology: v6e:2x2x1
jax: 0.10.0
libtpu: 0.0.40
codegen_flags: <defaults>
</compile_context>

<pallas_src>
from functools import partial

import jax
import jax.numpy as jnp
from jax import lax
from jax.experimental import pallas as pl
from jax.experimental.pallas import tpu as pltpu


# --------------------------------------------------------------------------
# Pallas kernel: one block of Bb batch elements per grid step, fully fused.
# --------------------------------------------------------------------------
def linear_attention_kernel(
    x_ref,       # (Bb, C, N)        input, NC(HW) layout
    wqkv_ref,    # (3*hidden, C)     to_qkv 1x1 conv weight (no bias)
    wo_ref,      # (C, hidden)       to_out 1x1 conv weight
    bo_ref,      # (C, 1)            to_out bias
    g_ref,       # (C, 1)            GroupNorm(1, C) gamma
    b_ref,       # (C, 1)            GroupNorm(1, C) beta
    mask_ref,    # (hidden, hidden)  block-diagonal head mask
    o_ref,       # (Bb, C, N)        output
    *, heads, dim_head, scale, eps, matmul_dtype,
):
    Bb, C, N = x_ref.shape
    hidden = heads * dim_head

    # Grid-step-invariant loads hoisted out of the (static) batch loop.
    wqkv = wqkv_ref[...]
    wo = wo_ref[...]
    bo = bo_ref[...]
    gamma = g_ref[...]
    beta = b_ref[...]
    mask = mask_ref[...]

    for bi in range(Bb):                     # Bb is small & static -> unrolled
        x = x_ref[bi]                        # (C, N)

        # ---- to_qkv: 1x1 conv, no bias -> (3*hidden, N), f32 accumulation ----
        qkv = jnp.dot(wqkv, x, preferred_element_type=jnp.float32)

        q = qkv[0:hidden, :]                 # (hidden, N)
        k = qkv[hidden:2 * hidden, :]        # (hidden, N)
        v = qkv[2 * hidden:3 * hidden, :]    # (hidden, N)

        # ---- q: per-head softmax over dim_head (sublane reductions via reshape) --
        q3 = q.reshape(heads, dim_head, N)
        q3 = jnp.exp(q3 - jnp.max(q3, axis=1, keepdims=True))
        # reciprocal-multiply with `scale` folded in (approx=True would use the EUP
        # slot but loosens precision; kept exact to stay within 1e-3 of f32 ref).
        qinv = pl.reciprocal(jnp.sum(q3, axis=1, keepdims=True))        # (heads,1,N)
        q = (q3 * (scale * qinv)).reshape(hidden, N)

        # ---- k: softmax over n, once on the full (hidden, N) slab ---------------
        k = jnp.exp(k - jnp.max(k, axis=1, keepdims=True))
        k = k * pl.reciprocal(jnp.sum(k, axis=1, keepdims=True))        # (hidden, N)

        # ---- attention: two full-width matmuls instead of 2*heads tiny ones -----
        # ct[e, d] = sum_n v[e, n] * k[d, n]; block-diag mask keeps heads separate.
        ct = lax.dot_general(v.astype(matmul_dtype), k.astype(matmul_dtype),
                             (((1,), (1,)), ((), ())),
                             preferred_element_type=jnp.float32)        # (hid, hid)
        ct = ct * mask
        out = jnp.dot(ct.astype(matmul_dtype), q.astype(matmul_dtype),
                      preferred_element_type=jnp.float32)               # (hidden, N)

        # ---- to_out: 1x1 conv + bias --------------------------------------------
        y = jnp.dot(wo, out.astype(matmul_dtype),
                    preferred_element_type=jnp.float32) + bo            # (C, N)

        # ---- GroupNorm(1, C): single-pass stats over all (C, N) elements, f32 ---
        inv_cn = 1.0 / float(C * N)
        s1 = jnp.sum(jnp.sum(y, axis=1, keepdims=True),
                     axis=0, keepdims=True) * inv_cn                    # mean (1,1)
        s2 = jnp.sum(jnp.sum(y * y, axis=1, keepdims=True),
                     axis=0, keepdims=True) * inv_cn                    # E[y^2]
        var = s2 - s1 * s1
        yn = (y - s1) * lax.rsqrt(var + eps)

        o_ref[bi] = (yn * gamma + beta).astype(o_ref.dtype)             # lane-dense


# --------------------------------------------------------------------------
# Wrapper (NCHW in / NCHW out, like the PyTorch module)
# --------------------------------------------------------------------------
def _pick_batch_block(B):
    # Largest Bb dividing B while keeping >= 2 grid steps (v7x has 2 TensorCores;
    # collapsing the grid to a single step would leave one idle). v5e/v6e benefit
    # from Bb > 1 because their grid is a serial loop with ~0.35us/step overhead.
    for bb in (8, 4, 2):
        if B % bb == 0 and B // bb >= 2:
            return bb
    return 1


def linear_attention_pallas(x_nchw, params, heads=4, dim_head=32,
                            matmul_dtype=jnp.float32):
    B, C, H, W = x_nchw.shape
    N = H * W
    hidden = heads * dim_head
    scale = dim_head ** (-0.5)
    Bb = _pick_batch_block(B)

    # Grid-invariant preprocessing hoisted out of the kernel.
    x = x_nchw.reshape(B, C, N).astype(matmul_dtype)
    wqkv = params["w_qkv"][:, :, 0, 0].astype(matmul_dtype)          # (3*hidden, C)
    wo = params["w_out"][:, :, 0, 0].astype(matmul_dtype)            # (C, hidden)
    bo = params["b_out"].reshape(C, 1).astype(jnp.float32)
    gamma = params["gn_g"].reshape(C, 1).astype(jnp.float32)
    beta = params["gn_b"].reshape(C, 1).astype(jnp.float32)

    # Block-diagonal (heads x dim_head) mask, built once (grid-invariant).
    head_id = jnp.arange(hidden, dtype=jnp.int32) // dim_head
    mask = (head_id[:, None] == head_id[None, :]).astype(jnp.float32)

    kernel = partial(linear_attention_kernel, heads=heads, dim_head=dim_head,
                     scale=scale, eps=1e-5, matmul_dtype=matmul_dtype)

    full = lambda shp: pl.BlockSpec(shp, lambda b: (0,) * len(shp))

    # Rough per-step working set; raise the scoped-VMEM limit only when the default
    # would be tight (real UNet resolutions).
    # TODO(synk): tile N inside the kernel (streaming k-softmax denominator and
    # context accumulation) once the (hidden, N) slabs stop fitting v7x's 64 MiB VMEM.
    itemsize = jnp.dtype(matmul_dtype).itemsize
    est = (2 * 2 * Bb * C * N * itemsize                       # x/out blocks, x2 buf
           + (3 * hidden * C + C * hidden) * itemsize          # weights
           + (hidden * hidden + 3 * C) * 4                     # mask + bias/gn params
           + (4 * hidden * N + hidden * hidden + 2 * C * N) * 4)  # live intermediates
    vmem_limit = min(2 * est, 100 << 20) if 2 * est > (32 << 20) else None

    out = pl.pallas_call(
        kernel,
        out_shape=jax.ShapeDtypeStruct((B, C, N), jnp.float32),
        grid=(B // Bb,),
        in_specs=[
            pl.BlockSpec((Bb, C, N), lambda b: (b, 0, 0)),     # x block for step b
            full((3 * hidden, C)),                             # to_qkv weight
            full((C, hidden)),                                 # to_out weight
            full((C, 1)),                                      # to_out bias
            full((C, 1)),                                      # gn gamma
            full((C, 1)),                                      # gn beta
            full((hidden, hidden)),                            # block-diag head mask
        ],
        out_specs=pl.BlockSpec((Bb, C, N), lambda b: (b, 0, 0)),
        compiler_params=pltpu.CompilerParams(
            dimension_semantics=("parallel",),                 # megacore on v7x
            vmem_limit_bytes=vmem_limit),
    )(x, wqkv, wo, bo, gamma, beta, mask)

    return out.reshape(B, C, H, W)


# --------------------------------------------------------------------------
# Pure-JAX reference (mirrors the PyTorch module) for correctness checking
# --------------------------------------------------------------------------
def linear_attention_ref(x_nchw, params, heads, dim_head):
    B, C, H, W = x_nchw.shape
    N = H * W
    hidden = heads * dim_head
    scale = dim_head ** (-0.5)

    x = x_nchw.reshape(B, C, N)
    qkv = jnp.einsum("oc,bcn->bon", params["w_qkv"][:, :, 0, 0], x)      # (B, 3*hid, N)
    q, k, v = jnp.split(qkv, 3, axis=1)
    rh = lambda t: t.reshape(B, heads, dim_head, N)
    q, k, v = rh(q), rh(k), rh(v)

    q = jax.nn.softmax(q, axis=-2)
    k = jax.nn.softmax(k, axis=-1)
    q = q * scale

    context = jnp.einsum("bhdn,bhen->bhde", k, v)
    out = jnp.einsum("bhde,bhdn->bhen", context, q).reshape(B, hidden, N)

    y = jnp.einsum("oc,bcn->bon", params["w_out"][:, :, 0, 0], out) \
        + params["b_out"][None, :, None]

    mean = jnp.mean(y, axis=(1, 2), keepdims=True)
    var = jnp.mean((y - mean) ** 2, axis=(1, 2), keepdims=True)
    yn = (y - mean) * lax.rsqrt(var + 1e-5)
    yn = yn * params["gn_g"][None, :, None] + params["gn_b"][None, :, None]
    return yn.reshape(B, C, H, W)


# --------------------------------------------------------------------------
if __name__ == "__main__":
    dim, H, W = 32, 16, 16
    heads, dim_head = 4, 32
    hidden = heads * dim_head            # 128

    key = jax.random.PRNGKey(0)
    ks = jax.random.split(key, 8)
    f32 = jnp.float32

    params = dict(
        w_qkv=0.2 * jax.random.normal(ks[1], (3 * hidden, dim, 1, 1), f32),
        w_out=0.2 * jax.random.normal(ks[2], (dim, hidden, 1, 1), f32),
        b_out=0.1 * jax.random.normal(ks[3], (dim,), f32),
        gn_g=1.0 + 0.1 * jax.random.normal(ks[4], (dim,), f32),
        gn_b=0.1 * jax.random.normal(ks[5], (dim,), f32),
    )

    def check(B, key_idx):
        x = jax.random.normal(ks[key_idx], (B, dim, H, W), f32)          # NCHW
        out = linear_attention_pallas(x, params, heads, dim_head)
        out = jax.block_until_ready(out)
        ref = linear_attention_ref(x, params, heads, dim_head)
        if not jnp.allclose(out, ref, rtol=1e-3, atol=1e-3):
            raise AssertionError(
                f"B={B}: mismatch vs reference, "
                f"max abs err {float(jnp.max(jnp.abs(out - ref)))}")

    check(2, 0)   # Bb=1 path (matches the requested small test shape)
    check(8, 6)   # Bb=4 path (exercises batch-blocked grid, 2 grid steps)

    print("KERNEL_OK")
</pallas_src>

<mosaic_0001>
module attributes {stable_mosaic.version = 11 : i64} {
  func.func @linear_attention_kernel(%arg0: i32, %arg1: memref<1x32x256xf32, #tpu.memory_space<vmem>>, %arg2: memref<384x32xf32, #tpu.memory_space<vmem>>, %arg3: memref<32x128xf32, #tpu.memory_space<vmem>>, %arg4: memref<32x1xf32, #tpu.memory_space<vmem>>, %arg5: memref<32x1xf32, #tpu.memory_space<vmem>>, %arg6: memref<32x1xf32, #tpu.memory_space<vmem>>, %arg7: memref<128x128xf32, #tpu.memory_space<vmem>>, %arg8: memref<1x32x256xf32, #tpu.memory_space<vmem>>) attributes {dimension_semantics = [#tpu.dimension_semantics<parallel>], iteration_bounds = array<i64: 2>, scalar_prefetch = 0 : i64, scratch_operands = 0 : i64, tpu.core_type = #tpu.core_type<tc>, window_params = [{transform_indices = @transform_0, window_bounds = array<i64: 1, 32, 256>}, {pipeline_mode = #tpu.pipeline_mode<synchronous>, transform_indices = @transform_1, window_bounds = array<i64: 384, 32>}, {pipeline_mode = #tpu.pipeline_mode<synchronous>, transform_indices = @transform_2, window_bounds = array<i64: 32, 128>}, {pipeline_mode = #tpu.pipeline_mode<synchronous>, transform_indices = @transform_3, window_bounds = array<i64: 32, 1>}, {pipeline_mode = #tpu.pipeline_mode<synchronous>, transform_indices = @transform_4, window_bounds = array<i64: 32, 1>}, {pipeline_mode = #tpu.pipeline_mode<synchronous>, transform_indices = @transform_5, window_bounds = array<i64: 32, 1>}, {pipeline_mode = #tpu.pipeline_mode<synchronous>, transform_indices = @transform_6, window_bounds = array<i64: 128, 128>}, {transform_indices = @transform_7, window_bounds = array<i64: 1, 32, 256>}]} {
    %c0 = arith.constant 0 : index
    %c0_0 = arith.constant 0 : index
    %0 = vector.load %arg2[%c0, %c0_0] : memref<384x32xf32, #tpu.memory_space<vmem>>, vector<384x32xf32>
    %c0_1 = arith.constant 0 : index
    %c0_2 = arith.constant 0 : index
    %1 = vector.load %arg3[%c0_1, %c0_2] : memref<32x128xf32, #tpu.memory_space<vmem>>, vector<32x128xf32>
    %c0_3 = arith.constant 0 : index
    %c0_4 = arith.constant 0 : index
    %2 = vector.load %arg4[%c0_3, %c0_4] : memref<32x1xf32, #tpu.memory_space<vmem>>, vector<32x1xf32>
    %c0_5 = arith.constant 0 : index
    %c0_6 = arith.constant 0 : index
    %3 = vector.load %arg5[%c0_5, %c0_6] : memref<32x1xf32, #tpu.memory_space<vmem>>, vector<32x1xf32>
    %c0_7 = arith.constant 0 : index
    %c0_8 = arith.constant 0 : index
    %4 = vector.load %arg6[%c0_7, %c0_8] : memref<32x1xf32, #tpu.memory_space<vmem>>, vector<32x1xf32>
    %c0_9 = arith.constant 0 : index
    %c0_10 = arith.constant 0 : index
    %5 = vector.load %arg7[%c0_9, %c0_10] : memref<128x128xf32, #tpu.memory_space<vmem>>, vector<128x128xf32>
    %c0_11 = arith.constant 0 : index
    %c0_12 = arith.constant 0 : index
    %c0_13 = arith.constant 0 : index
    %6 = vector.load %arg1[%c0_11, %c0_12, %c0_13] : memref<1x32x256xf32, #tpu.memory_space<vmem>>, vector<1x32x256xf32>
    %7 = vector.shape_cast %6 : vector<1x32x256xf32> to vector<32x256xf32>
    %cst = arith.constant dense<0.000000e+00> : vector<384x256xf32>
    %8 = tpu.matmul %0, %7, %cst {dimension_numbers = #tpu.dot_dimension_numbers<[1], [0], [0], [1], [0, 0, 1, 1], [], []>} : vector<384x32xf32>, vector<32x256xf32>, vector<384x256xf32> -> vector<384x256xf32>
    %9 = vector.extract_strided_slice %8 {offsets = [0, 0], sizes = [128, 256], strides = [1, 1]} : vector<384x256xf32> to vector<128x256xf32>
    %10 = vector.extract_strided_slice %8 {offsets = [128, 0], sizes = [128, 256], strides = [1, 1]} : vector<384x256xf32> to vector<128x256xf32>
    %11 = vector.extract_strided_slice %8 {offsets = [256, 0], sizes = [128, 256], strides = [1, 1]} : vector<384x256xf32> to vector<128x256xf32>
    %12 = vector.shape_cast %9 : vector<128x256xf32> to vector<4x32x256xf32>
    %cst_14 = arith.constant dense<0xFF800000> : vector<4x256xf32>
    %13 = vector.multi_reduction <maximumf>, %12, %cst_14 [1] : vector<4x32x256xf32> to vector<4x256xf32>
    %14 = vector.shape_cast %13 : vector<4x256xf32> to vector<4x1x256xf32>
    %15 = vector.broadcast %14 : vector<4x1x256xf32> to vector<4x32x256xf32>
    %16 = arith.subf %12, %15 : vector<4x32x256xf32>
    %17 = math.exp %16 : vector<4x32x256xf32>
    %cst_15 = arith.constant dense<0.000000e+00> : vector<4x256xf32>
    %18 = vector.multi_reduction <add>, %17, %cst_15 [1] : vector<4x32x256xf32> to vector<4x256xf32>
    %19 = vector.shape_cast %18 : vector<4x256xf32> to vector<4x1x256xf32>
    %20 = tpu.reciprocal %19 : vector<4x1x256xf32> -> vector<4x1x256xf32>
    %cst_16 = arith.constant 0.176776692 : f32
    %21 = vector.broadcast %cst_16 : f32 to vector<4x1x256xf32>
    %22 = arith.mulf %21, %20 : vector<4x1x256xf32>
    %23 = vector.broadcast %22 : vector<4x1x256xf32> to vector<4x32x256xf32>
    %24 = arith.mulf %17, %23 : vector<4x32x256xf32>
    %25 = vector.shape_cast %24 : vector<4x32x256xf32> to vector<128x256xf32>
    %cst_17 = arith.constant dense<0xFF800000> : vector<128xf32>
    %26 = vector.multi_reduction <maximumf>, %10, %cst_17 [1] : vector<128x256xf32> to vector<128xf32>
    %27 = vector.shape_cast %26 : vector<128xf32> to vector<128x1xf32>
    %28 = vector.broadcast %27 : vector<128x1xf32> to vector<128x256xf32>
    %29 = arith.subf %10, %28 : vector<128x256xf32>
    %30 = math.exp %29 : vector<128x256xf32>
    %cst_18 = arith.constant dense<0.000000e+00> : vector<128xf32>
    %31 = vector.multi_reduction <add>, %30, %cst_18 [1] : vector<128x256xf32> to vector<128xf32>
    %32 = vector.shape_cast %31 : vector<128xf32> to vector<128x1xf32>
    %33 = tpu.reciprocal %32 : vector<128x1xf32> -> vector<128x1xf32>
    %34 = vector.broadcast %33 : vector<128x1xf32> to vector<128x256xf32>
    %35 = arith.mulf %30, %34 : vector<128x256xf32>
    %cst_19 = arith.constant dense<0.000000e+00> : vector<128x128xf32>
    %36 = tpu.matmul %11, %35, %cst_19 {dimension_numbers = #tpu.dot_dimension_numbers<[1], [1], [0], [0], [0, 0, 1, 0], [], []>} : vector<128x256xf32>, vector<128x256xf32>, vector<128x128xf32> -> vector<128x128xf32>
    %37 = arith.mulf %36, %5 : vector<128x128xf32>
    %cst_20 = arith.constant dense<0.000000e+00> : vector<128x256xf32>
    %38 = tpu.matmul %37, %25, %cst_20 {dimension_numbers = #tpu.dot_dimension_numbers<[1], [0], [0], [1], [0, 0, 1, 1], [], []>} : vector<128x128xf32>, vector<128x256xf32>, vector<128x256xf32> -> vector<128x256xf32>
    %cst_21 = arith.constant dense<0.000000e+00> : vector<32x256xf32>
    %39 = tpu.matmul %1, %38, %cst_21 {dimension_numbers = #tpu.dot_dimension_numbers<[1], [0], [0], [1], [0, 0, 1, 1], [], []>} : vector<32x128xf32>, vector<128x256xf32>, vector<32x256xf32> -> vector<32x256xf32>
    %40 = vector.broadcast %2 : vector<32x1xf32> to vector<32x256xf32>
    %41 = arith.addf %39, %40 : vector<32x256xf32>
    %cst_22 = arith.constant dense<0.000000e+00> : vector<32xf32>
    %42 = vector.multi_reduction <add>, %41, %cst_22 [1] : vector<32x256xf32> to vector<32xf32>
    %43 = vector.shape_cast %42 : vector<32xf32> to vector<32x1xf32>
    %cst_23 = arith.constant dense<0.000000e+00> : vector<1xf32>
    %44 = vector.multi_reduction <add>, %43, %cst_23 [0] : vector<32x1xf32> to vector<1xf32>
    %45 = vector.shape_cast %44 : vector<1xf32> to vector<1x1xf32>
    %cst_24 = arith.constant 1.22070313E-4 : f32
    %46 = vector.broadcast %cst_24 : f32 to vector<1x1xf32>
    %47 = arith.mulf %45, %46 : vector<1x1xf32>
    %48 = arith.mulf %41, %41 : vector<32x256xf32>
    %cst_25 = arith.constant dense<0.000000e+00> : vector<32xf32>
    %49 = vector.multi_reduction <add>, %48, %cst_25 [1] : vector<32x256xf32> to vector<32xf32>
    %50 = vector.shape_cast %49 : vector<32xf32> to vector<32x1xf32>
    %cst_26 = arith.constant dense<0.000000e+00> : vector<1xf32>
    %51 = vector.multi_reduction <add>, %50, %cst_26 [0] : vector<32x1xf32> to vector<1xf32>
    %52 = vector.shape_cast %51 : vector<1xf32> to vector<1x1xf32>
    %cst_27 = arith.constant 1.22070313E-4 : f32
    %53 = vector.broadcast %cst_27 : f32 to vector<1x1xf32>
    %54 = arith.mulf %52, %53 : vector<1x1xf32>
    %55 = arith.mulf %47, %47 : vector<1x1xf32>
    %56 = arith.subf %54, %55 : vector<1x1xf32>
    %57 = vector.broadcast %47 : vector<1x1xf32> to vector<32x256xf32>
    %58 = arith.subf %41, %57 : vector<32x256xf32>
    %cst_28 = arith.constant 9.99999974E-6 : f32
    %59 = vector.broadcast %cst_28 : f32 to vector<1x1xf32>
    %60 = arith.addf %56, %59 : vector<1x1xf32>
    %61 = math.rsqrt %60 : vector<1x1xf32>
    %62 = vector.broadcast %61 : vector<1x1xf32> to vector<32x256xf32>
    %63 = arith.mulf %58, %62 : vector<32x256xf32>
    %64 = vector.broadcast %3 : vector<32x1xf32> to vector<32x256xf32>
    %65 = arith.mulf %63, %64 : vector<32x256xf32>
    %66 = vector.broadcast %4 : vector<32x1xf32> to vector<32x256xf32>
    %67 = arith.addf %65, %66 : vector<32x256xf32>
    %c0_29 = arith.constant 0 : index
    %c0_30 = arith.constant 0 : index
    %c0_31 = arith.constant 0 : index
    %68 = vector.load %arg8[%c0_29, %c0_30, %c0_31] : memref<1x32x256xf32, #tpu.memory_space<vmem>>, vector<1x32x256xf32>
    %69 = vector.shape_cast %68 : vector<1x32x256xf32> to vector<32x256xf32>
    %70 = vector.shape_cast %67 : vector<32x256xf32> to vector<1x32x256xf32>
    tpu.vector_store %arg8[%c0_29, %c0_30, %c0_31], %70 {strides = array<i32>} : memref<1x32x256xf32, #tpu.memory_space<vmem>>, vector<1x32x256xf32>,
    return
  }
  func.func @transform_0(%arg0: i32) -> (i32, i32, i32) {
    %c0_i32 = arith.constant 0 : i32
    %c0_i32_0 = arith.constant 0 : i32
    %c0_i32_1 = arith.constant 0 : i32
    return %arg0, %c0_i32, %c0_i32_0 : i32, i32, i32
  }
  func.func @transform_1(%arg0: i32) -> (i32, i32) {
    %c0_i32 = arith.constant 0 : i32
    %c0_i32_0 = arith.constant 0 : i32
    %c0_i32_1 = arith.constant 0 : i32
    return %c0_i32, %c0_i32_0 : i32, i32
  }
  func.func @transform_2(%arg0: i32) -> (i32, i32) {
    %c0_i32 = arith.constant 0 : i32
    %c0_i32_0 = arith.constant 0 : i32
    %c0_i32_1 = arith.constant 0 : i32
    return %c0_i32, %c0_i32_0 : i32, i32
  }
  func.func @transform_3(%arg0: i32) -> (i32, i32) {
    %c0_i32 = arith.constant 0 : i32
    %c0_i32_0 = arith.constant 0 : i32
    %c0_i32_1 = arith.constant 0 : i32
    return %c0_i32, %c0_i32_0 : i32, i32
  }
  func.func @transform_4(%arg0: i32) -> (i32, i32) {
    %c0_i32 = arith.constant 0 : i32
    %c0_i32_0 = arith.constant 0 : i32
    %c0_i32_1 = arith.constant 0 : i32
    return %c0_i32, %c0_i32_0 : i32, i32
  }
  func.func @transform_5(%arg0: i32) -> (i32, i32) {
    %c0_i32 = arith.constant 0 : i32
    %c0_i32_0 = arith.constant 0 : i32
    %c0_i32_1 = arith.constant 0 : i32
    return %c0_i32, %c0_i32_0 : i32, i32
  }
  func.func @transform_6(%arg0: i32) -> (i32, i32) {
    %c0_i32 = arith.constant 0 : i32
    %c0_i32_0 = arith.constant 0 : i32
    %c0_i32_1 = arith.constant 0 : i32
    return %c0_i32, %c0_i32_0 : i32, i32
  }
  func.func @transform_7(%arg0: i32) -> (i32, i32, i32) {
    %c0_i32 = arith.constant 0 : i32
    %c0_i32_0 = arith.constant 0 : i32
    %c0_i32_1 = arith.constant 0 : i32
    return %arg0, %c0_i32, %c0_i32_0 : i32, i32, i32
  }
}

</mosaic_0001>

<bundles_post_ra>
// kernel: tpu_custom_call.1
= control target key start
LH: loop header
LB: loop body
LE: loop exit
PB: predicated region body
PF: predicated region fallthrough
CT: control target
= control target key end

     0   :  { %12 = vsyncpa [#allocation3], 0  ;;  %s3582_s0 = inlined_call_operand.vmem [shape: f32[2,32,256], index: 0, kind: input, shape index: {}]   ;;  %s3583_s1 = inlined_call_operand.vmem [shape: f32[384,32], index: 1, kind: input, shape index: {}]   ;;  %s3584_s2 = inlined_call_operand.vmem [shape: f32[32,128], index: 2, kind: input, shape index: {}]   ;;  %s3585_s3 = inlined_call_operand.vmem [shape: f32[32,1], index: 3, kind: input, shape index: {}]   ;;  %s3586_s4 = inlined_call_operand.vmem [shape: f32[32,1], index: 4, kind: input, shape index: {}]   ;;  %s3587_s5 = inlined_call_operand.vmem [shape: f32[32,1], index: 5, kind: input, shape index: {}]   ;;  %s3588_s6 = inlined_call_operand.vmem [shape: f32[128,128], index: 6, kind: input, shape index: {}]   ;;  %s3589_s7 = inlined_call_operand.hbm [shape: f32[2,32,256], index: 7, kind: output, shape index: {}]  }
   0x1   :  { %14 = vsyncpa [#allocation3 + $0x1], 0  ;;  %s2458_s24 = smov 0   ;;  %s2460_s25 = smov 0  }
   0x2   :  { %s2462_s26 = smov 0   ;;  %s2464_s27 = smov 0  }
   0x3 LB: > { %s2479_s28 = sadd.s32 4294967295, %s2411_s27   ;;  %s2034_s29 = sadd.s32 4294967294, %s2411_s27   ;;  %s2411_s27 = sphi %s2464_s27, %s3632_s27   ;;  %s2407_s26 = sphi %s2462_s26, %s3631_s26   ;;  %s2403_s25 = sphi %s2460_s25, %s3630_s25   ;;  %s2399_s24 = sphi %s2458_s24, %s3629_s24  }
   0x4   : > { %s2483_s30 = sadd.s32 1, %s2411_s27   ;;  %s179_s8 = sadd.s32 1, %s2407_s26 }
   0x5   : > { %s176_s9 = ssub.s32 %s2411_s27, %s2483_s30  ;;  %p189_p0 = scmp.ne.s32.totalorder %s2407_s26, %s2403_s25 }
   0x6   : > { %p177_p1 = scmp.eq.s32.totalorder %s176_s9, 0  ;;  %p190_p2 = scmp.eq.s32.totalorder %s2479_s28, 1 }
   0x7   : > { %p195_p3 = scmp.ne.s32.totalorder %s2403_s25, %s2399_s24  ;;  %p196_p4 = scmp.eq.s32.totalorder %s2034_s29, 1 }
   0x8   : > { %s2494_s10 = scalar_select %p177_p1, %s2407_s26, %s179_s8  }
   0x9   : > { %p2496_p5 = por %p190_p2, %p189_p0  ;;  %p2500_p6 = por %p196_p4, %p195_p3 }
   0xa   : > { %p2037_p7 = scmp.ge.s32.totalorder %s2411_s27, 1  ;;  %p240_p8 = scmp.lt.s32.totalorder %s2411_s27, 3 }
   0xc   : > { %p241_p9 = pnand %p2037_p7, %p240_p8 }
   0xe   : > { %244 = sbr.rel (%p241_p9) target bundleno = 1628 (0x65c), region = 48 }
  0x13   : > { %p272_p10 = scmp.lt.s32.totalorder %s2479_s28, 1  ;;  %v3590_v0 = vmov 0.0   ;;  %v277_v9 = vld [vmem:[%s3583_s1] sm:$0xff]  ;;  %vm365_vm0 = vcmask 261120   ;;  %v278_v10 = vld [vmem:[%s3583_s1 + $0x8] sm:$0xff]  ;;  %v279_v11 = vld [vmem:[%s3583_s1 + $0x10] sm:$0xff] }
  0x14   : > { %574 = vmatprep.mubr.f32.mxu0 %v3590_v0  ;;  %v280_v12 = vld [vmem:[%s3583_s1 + $0x18] sm:$0xff]  ;;  %v281_v13 = vld [vmem:[%s3583_s1 + $0x20] sm:$0xff]  ;;  %v282_v14 = vld [vmem:[%s3583_s1 + $0x28] sm:$0xff]  ;;  %s269_s29 = sand.u32 1, %s2403_s25   ;;  %s2095_s9 = sshll.u32 %s2479_s28, 10 }
  0x15   : > { %s273_s13 = scalar_select %p272_p10, %s2479_s28, 1  ;;  %v283_v15 = vld [vmem:[%s3583_s1 + $0x30] sm:$0xff]  ;;  %v284_v16 = vld [vmem:[%s3583_s1 + $0x38] sm:$0xff]  ;;  %v285_v17 = vld [vmem:[%s3583_s1 + $0x40] sm:$0xff] }
  0x16   : > { %v286_v18 = vld [vmem:[%s3583_s1 + $0x48] sm:$0xff]  ;;  %v287_v19 = vld [vmem:[%s3583_s1 + $0x50] sm:$0xff]  ;;  %v288_v20 = vld [vmem:[%s3583_s1 + $0x58] sm:$0xff]  ;;  %s2038_s8 = sshll.u32 %s269_s29, 6  ;;  %s3536_s28 = scalar_lea.hbm %s3589_s7, %s2095_s9 }
  0x17   : > { %s2094_s14 = sshll.u32 %s273_s13, 6  ;;  %v289_v21 = vld [vmem:[%s3583_s1 + $0x60] sm:$0xff]  ;;  %v290_v22 = vld [vmem:[%s3583_s1 + $0x68] sm:$0xff]  ;;  %v291_v23 = vld [vmem:[%s3583_s1 + $0x70] sm:$0xff]  ;;  %s271_s13 = scalar_lea.vmem [#allocation2], %s2038_s8 }
  0x18   : > { %s276_s17 = scalar_lea.vmem %s3582_s0, %s2094_s14  ;;  %v292_v24 = vld [vmem:[%s3583_s1 + $0x78] sm:$0xff]  ;;  %v293_v25 = vld [vmem:[%s3583_s1 + $0x80] sm:$0xff]  ;;  %v294_v26 = vld [vmem:[%s3583_s1 + $0x88] sm:$0xff]  ;;  %s1972_s14 = sshll.u32 %s271_s13, 4  ;;  %s3538_s14 = int_to_ptr.vmem [resolvable:$true] %s1972_s14 }
  0x19   : > { %v364_v1 = vld [vmem:[%s276_s17 + $0x38] sm:$0xff]  ;;  %v363_v2 = vld [vmem:[%s276_s17 + $0x30] sm:$0xff]  ;;  %v362_v3 = vld [vmem:[%s276_s17 + $0x28] sm:$0xff]  ;;  %s2351_s18 = scalar_lea.vmem %s3538_s14, 1024  ;;  %s2415_s19 = smov [#allocation2]  }
  0x1a   : > { %534 = vmatprep.subr.mxu0 %v364_v1  ;;  %v361_v4 = vld [vmem:[%s276_s17 + $0x20] sm:$0xff]  ;;  %v360_v5 = vld [vmem:[%s276_s17 + $0x18] sm:$0xff]  ;;  %v359_v6 = vld [vmem:[%s276_s17 + $0x10] sm:$0xff]  ;;  %p2352_p11 = scmp.ne.s32.totalorder %s3538_s14, %s2351_s18  ;;  %s2355_s20 = sshll.u32 %s2415_s19, 4  ;;  %s2356_s20 = int_to_ptr.vmem [resolvable:$false] %s2355_s20 }
  0x1b   : > { %535 = vmatpush1.msra.mxu0 %v363_v2  ;;  %v358_v7 = vld [vmem:[%s276_s17 + $0x8] sm:$0xff]  ;;  %v357_v8 = vld [vmem:[%s276_s17] sm:$0xff]  ;;  %v295_v27 = vld [vmem:[%s3583_s1 + $0x90] sm:$0xff]  ;;  %s3542_s17 = scalar_lea.sflag [#allocation3], %s269_s29  ;;  %s2357_s21 = scalar_lea.vmem %s2356_s20, 2048 }
  0x1c   : > { %536 = vmatprep.subr.mxu0 %v362_v3  ;;  %v296_v28 = vld [vmem:[%s3583_s1 + $0x98] sm:$0xff]  ;;  %v297_v29 = vld [vmem:[%s3583_s1 + $0xa0] sm:$0xff]  ;;  %v298_v30 = vld [vmem:[%s3583_s1 + $0xa8] sm:$0xff]  ;;  %p2353_p12 = pnand %p2352_p11, %p2496_p5  ;;  %p2358_p0 = scmp.lt.s32.totalorder %s3538_s14, %s2356_s20 }
  0x1d   : > { %537 = vmatpush1.msra.mxu0 %v361_v4  ;;  %v299_v31 = vld [vmem:[%s3583_s1 + $0xb0] sm:$0xff]  ;;  %v300_v32 = vld [vmem:[%s3583_s1 + $0xb8] sm:$0xff]  ;;  %v301_v33 = vld [vmem:[%s3583_s1 + $0xc0] sm:$0xff]  ;;  %p2359_p1 = scmp.lt.s32.totalorder %s2357_s21, %s2351_s18 }
  0x1e   : > { %538 = vmatprep.subr.mxu0 %v360_v5  ;;  %v302_v34 = vld [vmem:[%s3583_s1 + $0xc8] sm:$0xff]  ;;  %v303_v35 = vld [vmem:[%s3583_s1 + $0xd0] sm:$0xff]  ;;  %v304_v36 = vld [vmem:[%s3583_s1 + $0xd8] sm:$0xff]  ;;  %p2354_p13 = pneg %p2353_p12 }
  0x1f   : > { %539 = vmatpush1.msra.mxu0 %v359_v6  ;;  %v305_v37 = vld [vmem:[%s3583_s1 + $0xe0] sm:$0xff]  ;;  %v306_v38 = vld [vmem:[%s3583_s1 + $0xe8] sm:$0xff]  ;;  %v307_v39 = vld [vmem:[%s3583_s1 + $0xf0] sm:$0xff]  ;;  %p2360_p2 = por %p2359_p1, %p2358_p0 }
  0x20   : > { %540 = vmatprep.subr.mxu0 %v358_v7  ;;  %v308_v40 = vld [vmem:[%s3583_s1 + $0xf8] sm:$0xff] }
  0x21   : > { %541 = vmatpush1.msra.mxu0 %v357_v8  ;;  %p2361_p3 = pnand %p2360_p2, %p2354_p13 }
  0x22   : > { %2041 = vmatmul.mubr.msk.f32.vlgmr.msra.gmra.mxu0 %vm365_vm0, %v277_v9 }
  0x23   : > { %580 = vmatprep.mubr.f32.mxu0 %v3590_v0 }
  0x26   : > { %2042 = vmatmul.mubr.msk.f32.gmra.mxu0 %vm365_vm0, %v278_v10 }
  0x27   : > { %586 = vmatprep.mubr.f32.mxu0 %v3590_v0 }
  0x2a   : > { %2043 = vmatmul.mubr.msk.f32.gmra.mxu0 %vm365_vm0, %v279_v11 }
  0x2b   : > { %592 = vmatprep.mubr.f32.mxu0 %v3590_v0 }
  0x2e   : > { %2044 = vmatmul.mubr.msk.f32.gmra.mxu0 %vm365_vm0, %v280_v12 }
  0x2f   : > { %598 = vmatprep.mubr.f32.mxu0 %v3590_v0 }
  0x32   : > { %2045 = vmatmul.mubr.msk.f32.gmra.mxu0 %vm365_vm0, %v281_v13 }
  0x33   : > { %604 = vmatprep.mubr.f32.mxu0 %v3590_v0 }
  0x36   : > { %2046 = vmatmul.mubr.msk.f32.gmra.mxu0 %vm365_vm0, %v282_v14 }
  0x37   : > { %610 = vmatprep.mubr.f32.mxu0 %v3590_v0 }
  0x3a   : > { %2047 = vmatmul.mubr.msk.f32.gmra.mxu0 %vm365_vm0, %v283_v15 }
  0x3b   : > { %616 = vmatprep.mubr.f32.mxu0 %v3590_v0 }
  0x3e   : > { %2048 = vmatmul.mubr.msk.f32.gmra.mxu0 %vm365_vm0, %v284_v16 }
  0x3f   : > { %622 = vmatprep.mubr.f32.mxu0 %v3590_v0 }
  0x42   : > { %2049 = vmatmul.mubr.msk.f32.gmra.mxu0 %vm365_vm0, %v285_v17 }
  0x43   : > { %628 = vmatprep.mubr.f32.mxu0 %v3590_v0 }
  0x46   : > { %2050 = vmatmul.mubr.msk.f32.gmra.mxu0 %vm365_vm0, %v286_v18 }
  0x47   : > { %634 = vmatprep.mubr.f32.mxu0 %v3590_v0 }
  0x4a   : > { %2051 = vmatmul.mubr.msk.f32.gmra.mxu0 %vm365_vm0, %v287_v19 }
  0x4b   : > { %640 = vmatprep.mubr.f32.mxu0 %v3590_v0 }
  0x4e   : > { %2052 = vmatmul.mubr.msk.f32.gmra.mxu0 %vm365_vm0, %v288_v20 }
  0x4f   : > { %646 = vmatprep.mubr.f32.mxu0 %v3590_v0 }
  0x52   : > { %2053 = vmatmul.mubr.msk.f32.gmra.mxu0 %vm365_vm0, %v289_v21 }
  0x53   : > { %652 = vmatprep.mubr.f32.mxu0 %v3590_v0 }
  0x56   : > { %2054 = vmatmul.mubr.msk.f32.gmra.mxu0 %vm365_vm0, %v290_v22 }
  0x57   : > { %658 = vmatprep.mubr.f32.mxu0 %v3590_v0 }
  0x5a   : > { %2055 = vmatmul.mubr.msk.f32.gmra.mxu0 %vm365_vm0, %v291_v23 }
  0x5b   : > { %664 = vmatprep.mubr.f32.mxu0 %v3590_v0 }
  0x5e   : > { %2056 = vmatmul.mubr.msk.f32.gmra.mxu0 %vm365_vm0, %v292_v24 }
  0x5f   : > { %670 = vmatprep.mubr.f32.mxu0 %v3590_v0 }
  0x62   : > { %2057 = vmatmul.mubr.msk.f32.gmra.mxu0 %vm365_vm0, %v293_v25 }
  0x63   : > { %676 = vmatprep.mubr.f32.mxu0 %v3590_v0 }
  0x66   : > { %2058 = vmatmul.mubr.msk.f32.gmra.mxu0 %vm365_vm0, %v294_v26 }
  0x67   : > { %682 = vmatprep.mubr.f32.mxu0 %v3590_v0 }
  0x6a   : > { %2059 = vmatmul.mubr.msk.f32.gmra.mxu0 %vm365_vm0, %v295_v27 }
  0x6b   : > { %688 = vmatprep.mubr.f32.mxu0 %v3590_v0 }
  0x6e   : > { %2060 = vmatmul.mubr.msk.f32.gmra.mxu0 %vm365_vm0, %v296_v28 }
  0x6f   : > { %694 = vmatprep.mubr.f32.mxu0 %v3590_v0 }
  0x72   : > { %2061 = vmatmul.mubr.msk.f32.gmra.mxu0 %vm365_vm0, %v297_v29 }
  0x73   : > { %700 = vmatprep.mubr.f32.mxu0 %v3590_v0 }
  0x76   : > { %2062 = vmatmul.mubr.msk.f32.gmra.mxu0 %vm365_vm0, %v298_v30 }
  0x77   : > { %706 = vmatprep.mubr.f32.mxu0 %v3590_v0 }
  0x7a   : > { %2063 = vmatmul.mubr.msk.f32.gmra.mxu0 %vm365_vm0, %v299_v31 }
  0x7b   : > { %712 = vmatprep.mubr.f32.mxu0 %v3590_v0 }
  0x7e   : > { %2064 = vmatmul.mubr.msk.f32.gmra.mxu0 %vm365_vm0, %v300_v32 }
  0x7f   : > { %718 = vmatprep.mubr.f32.mxu0 %v3590_v0 }
  0x82   : > { %2065 = vmatmul.mubr.msk.f32.gmra.mxu0 %vm365_vm0, %v301_v33 }
  0x83   : > { %724 = vmatprep.mubr.f32.mxu0 %v3590_v0 }
  0x86   : > { %2066 = vmatmul.mubr.msk.f32.gmra.mxu0 %vm365_vm0, %v302_v34 }
  0x87   : > { %730 = vmatprep.mubr.f32.mxu0 %v3590_v0 }
  0x8a   : > { %2067 = vmatmul.mubr.msk.f32.gmra.mxu0 %vm365_vm0, %v303_v35 }
  0x8b   : > { %736 = vmatprep.mubr.f32.mxu0 %v3590_v0 }
  0x8e   : > { %2068 = vmatmul.mubr.msk.f32.gmra.mxu0 %vm365_vm0, %v304_v36 }
  0x8f   : > { %742 = vmatprep.mubr.f32.mxu0 %v3590_v0 }
  0x92   : > { %2069 = vmatmul.mubr.msk.f32.gmra.mxu0 %vm365_vm0, %v305_v37 }
  0x93   : > { %748 = vmatprep.mubr.f32.mxu0 %v3590_v0 }
  0x96   : > { %2070 = vmatmul.mubr.msk.f32.gmra.mxu0 %vm365_vm0, %v306_v38 }
  0x97   : > { %754 = vmatprep.mubr.f32.mxu0 %v3590_v0 }
  0x9a   : > { %2071 = vmatmul.mubr.msk.f32.gmra.mxu0 %vm365_vm0, %v307_v39 }
  0x9b   : > { %760 = vmatprep.mubr.f32.mxu0 %v3590_v0 }
  0x9e   : > { %2072 = vmatmul.mubr.msk.f32.gmra.mxu0 %vm365_vm0, %v308_v40 }
  0x9f   : > { %766 = vmatprep.mubr.f32.mxu0 %v3590_v0 }
  0xe2   : > { %v576_v41 = vpop.f32.mrf.mxu0 }
  0xe4   : > { %v578_v42 = vpop.f32.mrf.mxu0 }
  0xe6   : > { %v582_v43 = vpop.f32.mrf.mxu0 }
  0xe7   : > { %v863_v44 = vmax.f32 %v576_v41, %v582_v43 }
  0xe8   : > { %v584_v45 = vpop.f32.mrf.mxu0 }
  0xe9   : > { %v872_v46 = vmax.f32 %v578_v42, %v584_v45 }
  0xea   : > { %v588_v47 = vpop.f32.mrf.mxu0 }
  0xeb   : > { %v864_v48 = vmax.f32 %v863_v44, %v588_v47 }
  0xec   : > { %v590_v49 = vpop.f32.mrf.mxu0 }
  0xed   : > { %v873_v50 = vmax.f32 %v872_v46, %v590_v49 }
  0xee   : > { %v594_v51 = vpop.f32.mrf.mxu0 }
  0xef   : > { %v865_v52 = vmax.f32 %v864_v48, %v594_v51 }
  0xf0   : > { %v596_v53 = vpop.f32.mrf.mxu0 }
  0xf1   : > { %v866_v54 = vrot.slane %v865_v52, 4  ;;  %v874_v55 = vmax.f32 %v873_v50, %v596_v53 }
  0xf2   : > { %v2672_v56 = vpop.f32.mrf.mxu0 }
  0xf3   : > { %v867_v57 = vmax.f32 %v865_v52, %v866_v54  ;;  %v875_v58 = vrot.slane %v874_v55, 4 }
  0xf4   : > { %v2674_v59 = vpop.f32.mrf.mxu0 }
  0xf5   : > { %v868_v60 = vrot.slane %v867_v57, 2  ;;  %v876_v61 = vmax.f32 %v874_v55, %v875_v58 }
  0xf6   : > { %v2676_v62 = vpop.f32.mrf.mxu0 }
  0xf7   : > { %v869_v63 = vmax.f32 %v867_v57, %v868_v60  ;;  %v877_v1 = vrot.slane %v876_v61, 2  ;;  %v881_v2 = vmax.f32 %v2672_v56, %v2676_v62 }
  0xf8   : > { %v2680_v3 = vpop.f32.mrf.mxu0 }
  0xf9   : > { %v870_v4 = vrot.slane %v869_v63, 1  ;;  %v878_v5 = vmax.f32 %v876_v61, %v877_v1  ;;  %v890_v6 = vmax.f32 %v2674_v59, %v2680_v3 }
  0xfa   : > { %v2684_v7 = vpop.f32.mrf.mxu0 }
  0xfb   : > { %v871_v8 = vmax.f32 %v869_v63, %v870_v4  ;;  %v879_v9 = vrot.slane %v878_v5, 1  ;;  %v882_v10 = vmax.f32 %v881_v2, %v2684_v7 }
  0xfc   : > { %v2687_v11 = vpop.f32.mrf.mxu0 }
  0xfd   : > { %v935_v12 = vsub.f32 %v576_v41, %v871_v8  ;;  %v937_v13 = vsub.f32 %v582_v43, %v871_v8  ;;  %v939_v14 = vsub.f32 %v588_v47, %v871_v8  ;;  %v941_v15 = vsub.f32 %v594_v51, %v871_v8 }
  0xfe   : > { %v880_v16 = vmax.f32 %v878_v5, %v879_v9  ;;  %v891_v17 = vmax.f32 %v890_v6, %v2687_v11  ;;  %v618_v18 = vpop.f32.mrf.mxu0 }
  0xff   : > { %v967_v19 = vmul.f32 1.442695, %v935_v12  ;;  %v971_v20 = vmul.f32 1.442695, %v937_v13  ;;  %v975_v21 = vmul.f32 1.442695, %v939_v14  ;;  %v883_v22 = vmax.f32 %v882_v10, %v618_v18 }
 0x100   : > { %v979_v23 = vmul.f32 1.442695, %v941_v15  ;;  %v936_v24 = vsub.f32 %v578_v42, %v880_v16  ;;  %v938_v25 = vsub.f32 %v584_v45, %v880_v16  ;;  %v940_v26 = vsub.f32 %v590_v49, %v880_v16  ;;  %v2690_v27 = vpop.f32.mrf.mxu0 }
 0x101   : > { %2173 = vpow2.f32 %v967_v19  ;;  %v942_v28 = vsub.f32 %v596_v53, %v880_v16  ;;  %v884_v29 = vrot.slane %v883_v22, 4  ;;  %v892_v30 = vmax.f32 %v891_v17, %v2690_v27 }
 0x102   : > { %2175 = vpow2.f32 %v971_v20  ;;  %v969_v31 = vmul.f32 1.442695, %v936_v24  ;;  %v973_v32 = vmul.f32 1.442695, %v938_v25  ;;  %v2693_v33 = vpop.f32.mrf.mxu0  ;;  %v977_v36 = vmul.f32 1.442695, %v940_v26 }
 0x103   : > { %2177 = vpow2.f32 %v975_v21  ;;  %v885_v34 = vmax.f32 %v883_v22, %v884_v29  ;;  %v893_v35 = vrot.slane %v892_v30, 4  ;;  %v981_v40 = vmul.f32 1.442695, %v942_v28 }
 0x104   : > { %2179 = vpow2.f32 %v979_v23  ;;  %v2695_v37 = vpop.f32.mrf.mxu0 }
 0x105   : > { %2181 = vpow2.f32 %v969_v31  ;;  %v886_v38 = vrot.slane %v885_v34, 2  ;;  %v894_v39 = vmax.f32 %v892_v30, %v893_v35 }
 0x106   : > { %2183 = vpow2.f32 %v973_v32  ;;  %v2697_v41 = vpop.f32.mrf.mxu0 }
 0x107   : > { %v887_v42 = vmax.f32 %v885_v34, %v886_v38  ;;  %v895_v43 = vrot.slane %v894_v39, 2  ;;  %v899_v44 = vmax.f32 %v2693_v33, %v2697_v41  ;;  %2185 = vpow2.f32 %v977_v36 }
 0x108   : > { %v2701_v45 = vpop.f32.mrf.mxu0  ;;  %2187 = vpow2.f32 %v981_v40 }
 0x109   : > { %v888_v46 = vrot.slane %v887_v42, 1  ;;  %v896_v47 = vmax.f32 %v894_v39, %v895_v43  ;;  %v908_v48 = vmax.f32 %v2695_v37, %v2701_v45 }
 0x10a   : > { %v2705_v49 = vpop.f32.mrf.mxu0 }
 0x10b   : > { %v889_v50 = vmax.f32 %v887_v42, %v888_v46  ;;  %v897_v51 = vrot.slane %v896_v47, 1  ;;  %v900_v52 = vmax.f32 %v899_v44, %v2705_v49 }
 0x10c   : > { %v2708_v53 = vpop.f32.mrf.mxu0 }
 0x10d   : > { %v943_v54 = vsub.f32 %v2672_v56, %v889_v50  ;;  %v945_v55 = vsub.f32 %v2676_v62, %v889_v50  ;;  %v947_v57 = vsub.f32 %v2684_v7, %v889_v50  ;;  %v949_v58 = vsub.f32 %v618_v18, %v889_v50 }
 0x10e   : > { %v2713_v60 = vpop.eup %2173  ;;  %v898_v61 = vmax.f32 %v896_v47, %v897_v51  ;;  %v909_v63 = vmax.f32 %v908_v48, %v2708_v53  ;;  %v2716_v1 = vpop.f32.mrf.mxu0 }
 0x10f   : > { %v2718_v2 = vpop.eup %2175  ;;  %v983_v4 = vmul.f32 1.442695, %v943_v54  ;;  %v987_v5 = vmul.f32 1.442695, %v945_v55  ;;  %v991_v6 = vmul.f32 1.442695, %v947_v57  ;;  %v901_v8 = vmax.f32 %v900_v52, %v2716_v1 }
 0x110   : > { %v2721_v56 = vpop.eup %2177  ;;  %v1031_v62 = vadd.f32 %v2718_v2, %v2713_v60  ;;  %v995_v7 = vmul.f32 1.442695, %v949_v58  ;;  %v944_v9 = vsub.f32 %v2674_v59, %v898_v61  ;;  %v946_v10 = vsub.f32 %v2680_v3, %v898_v61  ;;  %v2727_v12 = vpop.f32.mrf.mxu0 }
 0x111   : > { %v2729_v13 = vpop.eup %2179  ;;  %2189 = vpow2.f32 %v983_v4  ;;  %v948_v14 = vsub.f32 %v2687_v11, %v898_v61  ;;  %v950_v15 = vsub.f32 %v2690_v27, %v898_v61  ;;  %v902_v16 = vrot.slane %v901_v8, 4 }
 0x112   : > { %v2733_v17 = vpop.eup %2181  ;;  %v1032_v18 = vadd.f32 %v2721_v56, %v1031_v62  ;;  %2191 = vpow2.f32 %v987_v5  ;;  %v985_v19 = vmul.f32 1.442695, %v944_v9  ;;  %v989_v20 = vmul.f32 1.442695, %v946_v10  ;;  %v2736_v59 = vpop.f32.mrf.mxu0 }
 0x113   : > { %v2738_v3 = vpop.eup %2183  ;;  %2193 = vpow2.f32 %v991_v6  ;;  %v993_v21 = vmul.f32 1.442695, %v948_v14  ;;  %v903_v22 = vmax.f32 %v901_v8, %v902_v16  ;;  %v910_v24 = vmax.f32 %v909_v63, %v2727_v12 }
 0x114   : > { %v1033_v23 = vadd.f32 %v2729_v13, %v1032_v18  ;;  %v1040_v11 = vadd.f32 %v2738_v3, %v2733_v17  ;;  %2195 = vpow2.f32 %v995_v7  ;;  %v2744_v25 = vpop.f32.mrf.mxu0  ;;  %v2746_v26 = vpop.eup %2185  ;;  %v997_v27 = vmul.f32 1.442695, %v950_v15 }
 0x115   : > { %2197 = vpow2.f32 %v985_v19  ;;  %v904_v28 = vrot.slane %v903_v22, 2  ;;  %v911_v31 = vrot.slane %v910_v24, 4  ;;  %v2751_v34 = vpop.eup %2187 }
 0x116   : > { %v1034_v29 = vrot.slane %v1033_v23, 4  ;;  %v1041_v30 = vadd.f32 %v2746_v26, %v1040_v11  ;;  %2199 = vpow2.f32 %v989_v20  ;;  %v2749_v32 = vpop.f32.mrf.mxu0 }
 0x117   : > { %v905_v35 = vmax.f32 %v903_v22, %v904_v28  ;;  %v917_v36 = vmax.f32 %v2736_v59, %v2749_v32  ;;  %2201 = vpow2.f32 %v993_v21  ;;  %v912_v40 = vmax.f32 %v910_v24, %v911_v31 }
 0x118   : > { %v1035_v38 = vadd.f32 %v1034_v29, %v1033_v23  ;;  %v1042_v39 = vadd.f32 %v2751_v34, %v1041_v30  ;;  %v2756_v42 = vpop.f32.mrf.mxu0  ;;  %2203 = vpow2.f32 %v997_v27 }
 0x119   : > { %v906_v43 = vrot.slane %v905_v35, 1  ;;  %v926_v44 = vmax.f32 %v2744_v25, %v2756_v42  ;;  %v913_v48 = vrot.slane %v912_v40, 2 }
 0x11a   : > { %v1036_v46 = vrot.slane %v1035_v38, 2  ;;  %v1043_v47 = vrot.slane %v1042_v39, 4  ;;  %v2760_v50 = vpop.f32.mrf.mxu0 }
 0x11b   : > { %v907_v51 = vmax.f32 %v905_v35, %v906_v43  ;;  %v918_v52 = vmax.f32 %v917_v36, %v2760_v50  ;;  %v914_v57 = vmax.f32 %v912_v40, %v913_v48 }
 0x11c   : > { %v1037_v54 = vadd.f32 %v1036_v46, %v1035_v38  ;;  %v1044_v55 = vadd.f32 %v1043_v47, %v1042_v39  ;;  %v2763_v58 = vpop.f32.mrf.mxu0 }
 0x11d   : > { %v951_v61 = vsub.f32 %v2693_v33, %v907_v51  ;;  %v953_v63 = vsub.f32 %v2697_v41, %v907_v51  ;;  %v955_v4 = vsub.f32 %v2705_v49, %v907_v51  ;;  %v957_v5 = vsub.f32 %v2716_v1, %v907_v51 }
 0x11e   : > { %v2769_v6 = vpop.eup %2189  ;;  %v915_v8 = vrot.slane %v914_v57, 1  ;;  %v927_v62 = vmax.f32 %v926_v44, %v2763_v58  ;;  %v2772_v7 = vpop.f32.mrf.mxu0  ;;  %v1045_v9 = vrot.slane %v1044_v55, 2  ;;  %v1038_v16 = vrot.slane %v1037_v54, 1 }
 0x11f   : > { %v2774_v10 = vpop.eup %2191  ;;  %v999_v14 = vmul.f32 1.442695, %v951_v61  ;;  %v1003_v15 = vmul.f32 1.442695, %v953_v63  ;;  %v919_v33 = vmax.f32 %v918_v52, %v2772_v7  ;;  %v1007_v1 = vmul.f32 1.442695, %v955_v4 }
 0x120   : > { %v2777_v41 = vpop.eup %2193  ;;  %v1049_v49 = vadd.f32 %v2774_v10, %v2769_v6  ;;  %v1011_v18 = vmul.f32 1.442695, %v957_v5  ;;  %v916_v19 = vmax.f32 %v914_v57, %v915_v8  ;;  %v2781_v20 = vpop.f32.mrf.mxu0  ;;  %v1046_v11 = vadd.f32 %v1045_v9, %v1044_v55 }
 0x121   : > { %v2783_v21 = vpop.eup %2195  ;;  %2205 = vpow2.f32 %v999_v14  ;;  %v920_v22 = vrot.slane %v919_v33, 4  ;;  %v928_v23 = vmax.f32 %v927_v62, %v2781_v20  ;;  %v1039_v39 = vadd.f32 %v1038_v16, %v1037_v54 }
 0x122   : > { %v2786_v24 = vpop.eup %2197  ;;  %v1050_v27 = vadd.f32 %v2777_v41, %v1049_v49  ;;  %2207 = vpow2.f32 %v1003_v15  ;;  %v952_v28 = vsub.f32 %v2695_v37, %v916_v19  ;;  %v954_v29 = vsub.f32 %v2701_v45, %v916_v19  ;;  %v2791_v30 = vpop.f32.mrf.mxu0 }
 0x123   : > { %v2793_v31 = vpop.eup %2199  ;;  %v956_v35 = vsub.f32 %v2708_v53, %v916_v19  ;;  %v958_v36 = vsub.f32 %v2727_v12, %v916_v19  ;;  %v921_v38 = vmax.f32 %v919_v33, %v920_v22  ;;  %2209 = vpow2.f32 %v1007_v1 }
 0x124   : > { %v1051_v40 = vadd.f32 %v2783_v21, %v1050_v27  ;;  %v1058_v43 = vadd.f32 %v2793_v31, %v2786_v24  ;;  %v1001_v44 = vmul.f32 1.442695, %v952_v28  ;;  %v2800_v37 = vpop.f32.mrf.mxu0  ;;  %v2802_v45 = vpop.eup %2201  ;;  %2211 = vpow2.f32 %v1011_v18 }
 0x125   : > { %v1005_v46 = vmul.f32 1.442695, %v954_v29  ;;  %v1009_v47 = vmul.f32 1.442695, %v956_v35  ;;  %v1013_v48 = vmul.f32 1.442695, %v958_v36  ;;  %v2807_v54 = vpop.eup %2203 }
 0x126   : > { %v1052_v53 = vrot.slane %v1051_v40, 4  ;;  %v1059_v12 = vadd.f32 %v2802_v45, %v1058_v43  ;;  %2213 = vpow2.f32 %v1001_v44  ;;  %v922_v51 = vrot.slane %v921_v38, 2  ;;  %v2805_v52 = vpop.f32.mrf.mxu0 }
 0x127   : > { %2215 = vpow2.f32 %v1005_v46  ;;  %v929_v55 = vrot.slane %v928_v23, 4  ;;  %v1047_v57 = vrot.slane %v1046_v11, 1 }
 0x128   : > { %v1053_v61 = vadd.f32 %v1052_v53, %v1051_v40  ;;  %v1060_v63 = vadd.f32 %v2807_v54, %v1059_v12  ;;  %2217 = vpow2.f32 %v1009_v47  ;;  %v923_v4 = vmax.f32 %v921_v38, %v922_v51  ;;  %v2810_v5 = vpop.f32.mrf.mxu0 }
 0x129   : > { %2219 = vpow2.f32 %v1013_v48  ;;  %v930_v8 = vmax.f32 %v928_v23, %v929_v55  ;;  %v1048_v62 = vadd.f32 %v1047_v57, %v1046_v11 }
 0x12a   : > { %v1061_v9 = vrot.slane %v1060_v63, 4  ;;  %v924_v14 = vrot.slane %v923_v4, 1  ;;  %v2812_v15 = vpop.f32.mrf.mxu0  ;;  %2221 = vrcp.f32 %v1039_v39  ;;  %v1054_v16 = vrot.slane %v1053_v61, 2 }
 0x12b   : > { %v931_v33 = vrot.slane %v930_v8, 2  ;;  %2223 = vrcp.f32 %v1048_v62 }
 0x12c   : > { %v1062_v49 = vadd.f32 %v1061_v9, %v1060_v63  ;;  %v925_v1 = vmax.f32 %v923_v4, %v924_v14  ;;  %v2814_v18 = vpop.f32.mrf.mxu0  ;;  %v1055_v39 = vadd.f32 %v1054_v16, %v1053_v61 }
 0x12d   : > { %v932_v19 = vmax.f32 %v930_v8, %v931_v33 }
 0x12e   : > { %v2816_v22 = vpop.eup %2205  ;;  %v959_v27 = vsub.f32 %v2736_v59, %v925_v1  ;;  %v961_v23 = vsub.f32 %v2749_v32, %v925_v1  ;;  %v963_v11 = vsub.f32 %v2760_v50, %v925_v1  ;;  %v965_v28 = vsub.f32 %v2772_v7, %v925_v1  ;;  %v2822_v29 = vpop.f32.mrf.mxu0 }
 0x12f   : > { %v2824_v35 = vpop.eup %2207  ;;  %v933_v36 = vrot.slane %v932_v19, 1  ;;  %v1063_v38 = vrot.slane %v1062_v49, 2  ;;  %v1056_v14 = vrot.slane %v1055_v39, 1 }
 0x130   : > { %v1067_v40 = vadd.f32 %v2824_v35, %v2816_v22  ;;  %v1015_v43 = vmul.f32 1.442695, %v959_v27  ;;  %v1019_v44 = vmul.f32 1.442695, %v961_v23  ;;  %v2828_v46 = vpop.f32.mrf.mxu0  ;;  %v2830_v59 = vpop.eup %2209  ;;  %v1023_v32 = vmul.f32 1.442695, %v963_v11 }
 0x131   : > { %v934_v50 = vmax.f32 %v932_v19, %v933_v36  ;;  %v1064_v47 = vadd.f32 %v1063_v38, %v1062_v49  ;;  %v2832_v7 = vpop.eup %2211  ;;  %v1027_v53 = vmul.f32 1.442695, %v965_v28 }
 0x132   : > { %v1068_v48 = vadd.f32 %v2830_v59, %v1067_v40  ;;  %2225 = vpow2.f32 %v1015_v43  ;;  %v2835_v12 = vpop.f32.mrf.mxu0  ;;  %v1057_v40 = vadd.f32 %v1056_v14, %v1055_v39 }
 0x133   : > { %v2837_v51 = vpop.eup %2213  ;;  %2227 = vpow2.f32 %v1019_v44  ;;  %v960_v55 = vsub.f32 %v2744_v25, %v934_v50  ;;  %v962_v57 = vsub.f32 %v2756_v42, %v934_v50  ;;  %v964_v61 = vsub.f32 %v2763_v58, %v934_v50 }
 0x134   : > { %v2842_v63 = vpop.eup %2215  ;;  %v1069_v4 = vadd.f32 %v2832_v7, %v1068_v48  ;;  %v966_v8 = vsub.f32 %v2781_v20, %v934_v50  ;;  %v2846_v62 = vpop.f32.mrf.mxu0  ;;  %v1065_v9 = vrot.slane %v1064_v47, 1  ;;  %2229 = vpow2.f32 %v1023_v32 }
 0x135   : > { %v2848_v33 = vpop.eup %2217  ;;  %v1076_v16 = vadd.f32 %v2842_v63, %v2837_v51  ;;  %v1017_v25 = vmul.f32 1.442695, %v960_v55  ;;  %v1021_v42 = vmul.f32 1.442695, %v962_v57  ;;  %2231 = vpow2.f32 %v1027_v53 }
 0x136   : > { %v2852_v49 = vpop.eup %2219  ;;  %v1070_v58 = vrot.slane %v1069_v4, 4  ;;  %v1025_v1 = vmul.f32 1.442695, %v964_v61  ;;  %v1029_v19 = vmul.f32 1.442695, %v966_v8  ;;  %v2854_v27 = vpop.f32.mrf.mxu0  ;;  %v1066_v11 = vadd.f32 %v1065_v9, %v1064_v47 }
 0x137   : > { %v2222_v20 = vpop.eup %2221  ;;  %v1077_v23 = vadd.f32 %v2848_v33, %v1076_v16  ;;  %2233 = vpow2.f32 %v1017_v25 }
 0x138   : > { %v2224_v28 = vpop.eup %2223  ;;  %v1071_v36 = vadd.f32 %v1070_v58, %v1069_v4  ;;  %2235 = vpow2.f32 %v1021_v42  ;;  %v2857_v38 = vpop.f32.mrf.mxu0  ;;  %v1111_v43 = vmul.f32 0.17677669, %v2222_v20 }
 0x139   : > { %v1078_v44 = vadd.f32 %v2852_v49, %v1077_v23  ;;  %2237 = vpow2.f32 %v1025_v1  ;;  %v1112_v32 = vmul.f32 0.17677669, %v2224_v28 }
 0x13a   : > { %v1072_v50 = vrot.slane %v1071_v36, 2  ;;  %2239 = vpow2.f32 %v1029_v19  ;;  %v2860_v48 = vpop.f32.mrf.mxu0  ;;  %v2863_v53 = vmul.f32 %v2729_v13, %v1111_v43  ;;  %v2866_v47 = vmul.f32 %v2721_v56, %v1111_v43 }
 0x13b   : > { %v1079_v55 = vrot.slane %v1078_v44, 4  ;;  %2241 = vrcp.f32 %v1066_v11  ;;  %v2869_v57 = vmul.f32 %v2751_v34, %v1112_v32  ;;  %v2872_v39 = vmul.f32 %v2746_v26, %v1112_v32 }
 0x13c   : > { %3595 = vst [vmem:[#allocation5_spill] sm:$0xff] %v2863_v53  ;;  %3596 = vst [vmem:[#allocation6_spill] sm:$0xff] %v2866_v47  ;;  %v1073_v61 = vadd.f32 %v1072_v50, %v1071_v36  ;;  %v2874_v4 = vpop.f32.mrf.mxu0  ;;  %2243 = vrcp.f32 %v1057_v40  ;;  %v2877_v8 = vmul.f32 %v2738_v3, %v1112_v32  ;;  %v2880_v13 = vmul.f32 %v2718_v2, %v1111_v43 }
 0x13d   : > { %3597 = vst [vmem:[#allocation7_spill] sm:$0xff] %v2869_v57  ;;  %3598 = vst [vmem:[#allocation8_spill] sm:$0xff] %v2872_v39  ;;  %v1080_v56 = vadd.f32 %v1079_v55, %v1078_v44  ;;  %v2883_v9 = vmul.f32 %v2733_v17, %v1112_v32  ;;  %v2886_v34 = vmul.f32 %v2713_v60, %v1111_v43 }
 0x13e   : > { %3599 = vst [vmem:[#allocation9_spill] sm:$0xff] %v2877_v8  ;;  %3600 = vst [vmem:[#allocation10_spill] sm:$0xff] %v2880_v13  ;;  %v2888_v14 = vpop.f32.mrf.mxu0  ;;  %v1074_v26 = vrot.slane %v1073_v61, 1 }
 0x13f   : > { %3601 = vst [vmem:[#allocation11_spill] sm:$0xff] %v2883_v9  ;;  %3602 = vst [vmem:[#allocation12_spill] sm:$0xff] %v2886_v34  ;;  %v2890_v16 = vpop.eup %2225  ;;  %v1081_v25 = vrot.slane %v1080_v56, 2 }
 0x140   : > { %v2892_v42 = vpop.eup %2227  ;;  %v2894_v3 = vpop.f32.mrf.mxu0  ;;  %v1075_v58 = vadd.f32 %v1074_v26, %v1073_v61 }
 0x141   : > { %v1085_v2 = vadd.f32 %v2892_v42, %v2890_v16  ;;  %v1082_v1 = vadd.f32 %v1081_v25, %v1080_v56  ;;  %v2898_v17 = vpop.eup %2229 }
 0x142   : > { %v2900_v19 = vpop.f32.mrf.mxu0  ;;  %2245 = vrcp.f32 %v1075_v58  ;;  %v2902_v60 = vpop.eup %2231 }
 0x143   : > { %v1086_v20 = vadd.f32 %v2898_v17, %v1085_v2  ;;  %v1083_v23 = vrot.slane %v1082_v1, 1 }
 0x144   : > { %v2905_v11 = vpop.eup %2233  ;;  %v2907_v28 = vpop.f32.mrf.mxu0 }
 0x145   : > { %v2909_v36 = vpop.eup %2235  ;;  %v1087_v40 = vadd.f32 %v2902_v60, %v1086_v20  ;;  %v1084_v43 = vadd.f32 %v1083_v23, %v1082_v1 }
 0x146   : > { %v2912_v44 = vpop.eup %2237  ;;  %v1094_v32 = vadd.f32 %v2909_v36, %v2905_v11  ;;  %v2916_v50 = vpop.f32.mrf.mxu0 }
 0x147   : > { %v2918_v55 = vpop.eup %2239  ;;  %v1088_v61 = vrot.slane %v1087_v40, 4  ;;  %2247 = vrcp.f32 %v1084_v43 }
 0x148   : > { %v2242_v56 = vpop.eup %2241  ;;  %v1095_v26 = vadd.f32 %v2912_v44, %v1094_v32  ;;  %v2921_v25 = vpop.f32.mrf.mxu0 }
 0x149   : > { %v2244_v58 = vpop.eup %2243  ;;  %v1089_v2 = vadd.f32 %v1088_v61, %v1087_v40  ;;  %v1114_v20 = vmul.f32 0.17677669, %v2242_v56 }
 0x14a   : > { %v1096_v1 = vadd.f32 %v2918_v55, %v1095_v26  ;;  %v2924_v23 = vpop.f32.mrf.mxu0  ;;  %v1113_v0 = vmul.f32 0.17677669, %v2244_v58 }
 0x14b   : > { %v1090_v34 = vrot.slane %v1089_v2, 2  ;;  %v2927_v9 = vmul.f32 %v2807_v54, %v1114_v20  ;;  %v2930_v13 = vmul.f32 %v2802_v45, %v1114_v20  ;;  %v2933_v43 = vmul.f32 %v2793_v31, %v1114_v20 }
 0x14c   : > { %v1097_v32 = vrot.slane %v1096_v1, 4  ;;  %v2935_v8 = vpop.f32.mrf.mxu0  ;;  %v2938_v40 = vmul.f32 %v2783_v21, %v1113_v0  ;;  %v2941_v61 = vmul.f32 %v2777_v41, %v1113_v0  ;;  %v2944_v56 = vmul.f32 %v2774_v10, %v1113_v0 }
 0x14d   : > { %3603 = vst [vmem:[#allocation13_spill] sm:$0xff] %v2927_v9  ;;  %3604 = vst [vmem:[#allocation14_spill] sm:$0xff] %v2930_v13  ;;  %v1091_v54 = vadd.f32 %v1090_v34, %v1089_v2  ;;  %v2947_v26 = vmul.f32 %v2786_v24, %v1114_v20  ;;  %v2950_v45 = vmul.f32 %v2769_v6, %v1113_v0 }
 0x14e   : > { %3605 = vst [vmem:[#allocation15_spill] sm:$0xff] %v2933_v43  ;;  %3606 = vst [vmem:[#allocation16_spill] sm:$0xff] %v2938_v40  ;;  %v1098_v31 = vadd.f32 %v1097_v32, %v1096_v1  ;;  %v2952_v58 = vpop.f32.mrf.mxu0 }
 0x14f   : > { %3607 = vst [vmem:[#allocation17_spill] sm:$0xff] %v2941_v61  ;;  %3608 = vst [vmem:[#allocation18_spill] sm:$0xff] %v2944_v56  ;;  %v2246_v47 = vpop.eup %2245  ;;  %v1092_v39 = vrot.slane %v1091_v54, 1 }
 0x150   : > { %3609 = vst [vmem:[#allocation19_spill] sm:$0xff] %v2947_v26  ;;  %3610 = vst [vmem:[#allocation20_spill] sm:$0xff] %v2950_v45  ;;  %v2954_v21 = vpop.f32.mrf.mxu0  ;;  %v1099_v53 = vrot.slane %v1098_v31, 2  ;;  %v1115_v41 = vmul.f32 0.17677669, %v2246_v47  ;;  %v1175_v45 = vmax.f32 %v2900_v19, %v2907_v28 }
 0x151   : > { %v1093_v57 = vadd.f32 %v1092_v39, %v1091_v54 }
 0x152   : > { %v2956_v43 = vpop.f32.mrf.mxu0  ;;  %v1100_v10 = vadd.f32 %v1099_v53, %v1098_v31  ;;  %v2959_v34 = vmul.f32 %v2832_v7, %v1115_v41  ;;  %v2962_v24 = vmul.f32 %v2830_v59, %v1115_v41  ;;  %v2965_v0 = vmul.f32 %v2824_v35, %v1115_v41 }
 0x153   : > { %2249 = vrcp.f32 %v1093_v57  ;;  %v2968_v6 = vmul.f32 %v2816_v22, %v1115_v41  ;;  %v1181_v41 = vmax.f32 %v2924_v23, %v2935_v8 }
 0x154   : > { %v2248_v2 = vpop.eup %2247  ;;  %v2970_v20 = vpop.f32.mrf.mxu0  ;;  %v1101_v47 = vrot.slane %v1100_v10, 1 }
 0x155   : > { %v1116_v39 = vmul.f32 0.17677669, %v2248_v2 }
 0x156   : > { %v2972_v1 = vpop.f32.mrf.mxu0  ;;  %v1102_v53 = vadd.f32 %v1101_v47, %v1100_v10 }
 0x157   : > { %v2975_v7 = vmul.f32 %v2852_v49, %v1116_v39  ;;  %v2978_v59 = vmul.f32 %v2848_v33, %v1116_v39  ;;  %v2981_v35 = vmul.f32 %v2842_v63, %v1116_v39  ;;  %v2984_v22 = vmul.f32 %v2837_v51, %v1116_v39 }
 0x158   : > { %v2986_v57 = vpop.f32.mrf.mxu0  ;;  %2251 = vrcp.f32 %v1102_v53  ;;  %v1187_v33 = vmax.f32 %v2956_v43, %v2970_v20 }
 0x159   : > { %v1190_v32 = vmax.f32 %v2972_v1, %v2986_v57 }
 0x15a   : > { %v2990_v54 = vpop.f32.mrf.mxu0 }
 0x15b   : > { %1191 = vmax.xlane.f32.xlu1 %v1190_v32 }
 0x15c   : > { %v2992_v49 = vpop.f32.mrf.mxu0 }
 0x15e   : > { %v2996_v31 = vpop.f32.mrf.mxu0 }
 0x15f   : > { %1188 = vmax.xlane.f32.xlu1 %v1187_v33 }
 0x160   : > { %v2250_v63 = vpop.eup %2249  ;;  %v2998_v51 = vpop.f32.mrf.mxu0 }
 0x161   : > { %v1196_v10 = vmax.f32 %v2996_v31, %v2998_v51  ;;  %v1117_v2 = vmul.f32 0.17677669, %v2250_v63  ;;  %v1193_v63 = vmax.f32 %v2990_v54, %v2992_v49 }
 0x163   : > { %1182 = vmax.xlane.f32.xlu1 %v1181_v41  ;;  %1197 = vmax.xlane.f32.xlu0 %v1196_v10  ;;  %v3005_v47 = vmul.f32 %v2902_v60, %v1117_v2  ;;  %v3008_v39 = vmul.f32 %v2898_v17, %v1117_v2  ;;  %v3011_v53 = vmul.f32 %v2892_v42, %v1117_v2 }
 0x164   : > { %v3014_v32 = vmul.f32 %v2890_v16, %v1117_v2  ;;  %v1169_v10 = vmax.f32 %v2860_v48, %v2874_v4  ;;  %v1184_v2 = vmax.f32 %v2952_v58, %v2954_v21 }
 0x165   : > { %v2252_v33 = vpop.eup %2251 }
 0x166   : > { %v1118_v41 = vmul.f32 0.17677669, %v2252_v33  ;;  %v1166_v33 = vmax.f32 %v2854_v27, %v2857_v38 }
 0x167   : > { %1176 = vmax.xlane.f32.xlu1 %v1175_v45  ;;  %1194 = vmax.xlane.f32.xlu0 %v1193_v63  ;;  %v1151_v45 = vmax.f32 %v2791_v30, %v2800_v37  ;;  %v1160_v63 = vmax.f32 %v2822_v29, %v2828_v46 }
 0x168   : > { %v3021_v60 = vmul.f32 %v2918_v55, %v1118_v41  ;;  %v3024_v17 = vmul.f32 %v2912_v44, %v1118_v41  ;;  %v3027_v42 = vmul.f32 %v2909_v36, %v1118_v41  ;;  %v3030_v16 = vmul.f32 %v2905_v11, %v1118_v41 }
 0x169   : > { %v1163_v55 = vmax.f32 %v2835_v12, %v2846_v62  ;;  %v1178_v44 = vmax.f32 %v2916_v50, %v2921_v25  ;;  %v1157_v11 = vmax.f32 %v2812_v15, %v2814_v18  ;;  %v1172_v36 = vmax.f32 %v2888_v14, %v2894_v3 }
 0x16a   : > { %v1154_v41 = vmax.f32 %v2805_v52, %v2810_v5 }
 0x16b   : > { %1170 = vmax.xlane.f32.xlu1 %v1169_v10  ;;  %1185 = vmax.xlane.f32.xlu0 %v1184_v2  ;;  %v309_v10 = vld [vmem:[%s3583_s1 + $0x100] sm:$0xff]  ;;  %v3611_v2 = vmov 0.0  }
 0x16c   : > { %2073 = vmatmul.mubr.msk.f32.gmra.mxu0 %vm365_vm0, %v309_v10  ;;  %v318_v10 = vld [vmem:[%s3583_s1 + $0x148] sm:$0xff] }
 0x16d   : > { %772 = vmatprep.mubr.f32.mxu0 %v3611_v2 }
 0x16f   : > { %1164 = vmax.xlane.f32.xlu1 %v1163_v55  ;;  %1179 = vmax.xlane.f32.xlu0 %v1178_v44  ;;  %v310_v55 = vld [vmem:[%s3583_s1 + $0x108] sm:$0xff]  ;;  %v311_v44 = vld [vmem:[%s3583_s1 + $0x110] sm:$0xff] }
 0x170   : > { %2074 = vmatmul.mubr.msk.f32.gmra.mxu0 %vm365_vm0, %v310_v55  ;;  %v319_v55 = vld [vmem:[%s3583_s1 + $0x150] sm:$0xff] }
 0x171   : > { %778 = vmatprep.mubr.f32.mxu0 %v3611_v2 }
 0x173   : > { %1158 = vmax.xlane.f32.xlu1 %v1157_v11  ;;  %1173 = vmax.xlane.f32.xlu0 %v1172_v36  ;;  %v312_v11 = vld [vmem:[%s3583_s1 + $0x118] sm:$0xff]  ;;  %v313_v36 = vld [vmem:[%s3583_s1 + $0x120] sm:$0xff] }
 0x174   : > { %2075 = vmatmul.mubr.msk.f32.gmra.mxu0 %vm365_vm0, %v311_v44  ;;  %v320_v44 = vld [vmem:[%s3583_s1 + $0x158] sm:$0xff] }
 0x175   : > { %784 = vmatprep.mubr.f32.mxu0 %v3611_v2 }
 0x177   : > { %1152 = vmax.xlane.f32.xlu1 %v1151_v45  ;;  %1167 = vmax.xlane.f32.xlu0 %v1166_v33  ;;  %v314_v45 = vld [vmem:[%s3583_s1 + $0x128] sm:$0xff]  ;;  %v315_v33 = vld [vmem:[%s3583_s1 + $0x130] sm:$0xff] }
 0x178   : > { %2076 = vmatmul.mubr.msk.f32.gmra.mxu0 %vm365_vm0, %v312_v11  ;;  %v321_v11 = vld [vmem:[%s3583_s1 + $0x160] sm:$0xff] }
 0x179   : > { %790 = vmatprep.mubr.f32.mxu0 %v3611_v2 }
 0x17b   : > { %1161 = vmax.xlane.f32.xlu0 %v1160_v63  ;;  %v316_v63 = vld [vmem:[%s3583_s1 + $0x138] sm:$0xff] }
 0x17c   : > { %2077 = vmatmul.mubr.msk.f32.gmra.mxu0 %vm365_vm0, %v313_v36  ;;  %v322_v36 = vld [vmem:[%s3583_s1 + $0x168] sm:$0xff] }
 0x17d   : > { %796 = vmatprep.mubr.f32.mxu0 %v3611_v2 }
 0x17f   : > { %1155 = vmax.xlane.f32.xlu0 %v1154_v41  ;;  %v317_v41 = vld [vmem:[%s3583_s1 + $0x140] sm:$0xff] }
 0x180   : > { %2078 = vmatmul.mubr.msk.f32.gmra.mxu0 %vm365_vm0, %v314_v45  ;;  %v323_v45 = vld [vmem:[%s3583_s1 + $0x170] sm:$0xff] }
 0x181   : > { %802 = vmatprep.mubr.f32.mxu0 %v3611_v2 }
 0x184   : > { %2079 = vmatmul.mubr.msk.f32.gmra.mxu0 %vm365_vm0, %v315_v33  ;;  %v324_v33 = vld [vmem:[%s3583_s1 + $0x178] sm:$0xff] }
 0x185   : > { %808 = vmatprep.mubr.f32.mxu0 %v3611_v2 }
 0x188   : > { %2080 = vmatmul.mubr.msk.f32.gmra.mxu0 %vm365_vm0, %v316_v63 }
 0x189   : > { %814 = vmatprep.mubr.f32.mxu0 %v3611_v2 }
 0x18c   : > { %2081 = vmatmul.mubr.msk.f32.gmra.mxu0 %vm365_vm0, %v317_v41 }
 0x18d   : > { %820 = vmatprep.mubr.f32.mxu0 %v3611_v2 }
 0x190   : > { %2082 = vmatmul.mubr.msk.f32.gmra.mxu0 %vm365_vm0, %v318_v10 }
 0x191   : > { %826 = vmatprep.mubr.f32.mxu0 %v3611_v2 }
 0x194   : > { %2083 = vmatmul.mubr.msk.f32.gmra.mxu0 %vm365_vm0, %v319_v55 }
 0x195   : > { %832 = vmatprep.mubr.f32.mxu0 %v3611_v2 }
 0x198   : > { %2084 = vmatmul.mubr.msk.f32.gmra.mxu0 %vm365_vm0, %v320_v44 }
 0x199   : > { %838 = vmatprep.mubr.f32.mxu0 %v3611_v2 }
 0x19c   : > { %2085 = vmatmul.mubr.msk.f32.gmra.mxu0 %vm365_vm0, %v321_v11 }
 0x19d   : > { %844 = vmatprep.mubr.f32.mxu0 %v3611_v2 }
 0x1a0   : > { %2086 = vmatmul.mubr.msk.f32.gmra.mxu0 %vm365_vm0, %v322_v36 }
 0x1a1   : > { %850 = vmatprep.mubr.f32.mxu0 %v3611_v2 }
 0x1a4   : > { %2087 = vmatmul.mubr.msk.f32.gmra.mxu0 %vm365_vm0, %v323_v45 }
 0x1a5   : > { %856 = vmatprep.mubr.f32.mxu0 %v3611_v2 }
 0x1a8   : > { %2088 = vmatmul.mubr.msk.f32.gmra.mxu0 %vm365_vm0, %v324_v33 }
 0x1e4   : > { %v1192_v63 = vpop.xlane.xlu1 %1191 }
 0x1e5   : > { %v1225_v10 = vsub.f32 %v2972_v1, %v1192_v63  ;;  %v1226_v55 = vsub.f32 %v2986_v57, %v1192_v63 }
 0x1e7   : > { %v1283_v36 = vmul.f32 1.442695, %v1225_v10  ;;  %v1285_v2 = vmul.f32 1.442695, %v1226_v55 }
 0x1e8   : > { %v1189_v41 = vpop.xlane.xlu1 %1188 }
 0x1e9   : > { %v1223_v26 = vsub.f32 %v2956_v43, %v1189_v41  ;;  %v1224_v56 = vsub.f32 %v2970_v20, %v1189_v41  ;;  %2253 = vpow2.f32 %v1283_v36 }
 0x1ea   : > { %2255 = vpow2.f32 %v1285_v2 }
 0x1eb   : > { %v1279_v1 = vmul.f32 1.442695, %v1223_v26  ;;  %v1281_v10 = vmul.f32 1.442695, %v1224_v56 }
 0x1ec   : > { %v1183_v44 = vpop.xlane.xlu1 %1182  ;;  %v1198_v11 = vpop.xlane.xlu0 %1197 }
 0x1ed   : > { %v1229_v45 = vsub.f32 %v2996_v31, %v1198_v11  ;;  %v1230_v61 = vsub.f32 %v2998_v51, %v1198_v11  ;;  %v1219_v57 = vsub.f32 %v2924_v23, %v1183_v44  ;;  %v1220_v43 = vsub.f32 %v2935_v8, %v1183_v44 }
 0x1ef   : > { %v1291_v13 = vmul.f32 1.442695, %v1229_v45  ;;  %v1293_v33 = vmul.f32 1.442695, %v1230_v61  ;;  %v1271_v55 = vmul.f32 1.442695, %v1219_v57 }
 0x1f0   : > { %v1177_v40 = vpop.xlane.xlu1 %1176  ;;  %v1195_v9 = vpop.xlane.xlu0 %1194 }
 0x1f1   : > { %v1227_v63 = vsub.f32 %v2990_v54, %v1195_v9  ;;  %v1228_v31 = vsub.f32 %v2992_v49, %v1195_v9  ;;  %2257 = vpow2.f32 %v1291_v13  ;;  %v1215_v26 = vsub.f32 %v2900_v19, %v1177_v40 }
 0x1f2   : > { %2259 = vpow2.f32 %v1293_v33  ;;  %v1273_v54 = vmul.f32 1.442695, %v1220_v43  ;;  %v1216_v56 = vsub.f32 %v2907_v28, %v1177_v40 }
 0x1f3   : > { %v1287_v20 = vmul.f32 1.442695, %v1227_v63  ;;  %v1289_v51 = vmul.f32 1.442695, %v1228_v31  ;;  %2261 = vpow2.f32 %v1279_v1  ;;  %v1263_v2 = vmul.f32 1.442695, %v1215_v26 }
 0x1f4   : > { %v1171_v41 = vpop.xlane.xlu1 %1170  ;;  %v1186_v61 = vpop.xlane.xlu0 %1185  ;;  %2263 = vpow2.f32 %v1281_v10  ;;  %v1265_v19 = vmul.f32 1.442695, %v1216_v56 }
 0x1f5   : > { %v1221_v23 = vsub.f32 %v2952_v58, %v1186_v61  ;;  %v1222_v8 = vsub.f32 %v2954_v21, %v1186_v61  ;;  %2265 = vpow2.f32 %v1287_v20  ;;  %v1211_v44 = vsub.f32 %v2860_v48, %v1171_v41 }
 0x1f6   : > { %2267 = vpow2.f32 %v1289_v51  ;;  %v1212_v58 = vsub.f32 %v2874_v4, %v1171_v41  ;;  %v3151_v57 = vpop.eup %2253 }
 0x1f7   : > { %v1275_v9 = vmul.f32 1.442695, %v1221_v23  ;;  %v1277_v13 = vmul.f32 1.442695, %v1222_v8  ;;  %2269 = vpow2.f32 %v1271_v55  ;;  %v1255_v33 = vmul.f32 1.442695, %v1211_v44 }
 0x1f8   : > { %v1180_v49 = vpop.xlane.xlu0 %1179  ;;  %2271 = vpow2.f32 %v1273_v54  ;;  %v1165_v36 = vpop.xlane.xlu1 %1164 }
 0x1f9   : > { %v1217_v11 = vsub.f32 %v2916_v50, %v1180_v49  ;;  %v1218_v28 = vsub.f32 %v2921_v25, %v1180_v49  ;;  %2273 = vpow2.f32 %v1275_v9  ;;  %v1207_v1 = vsub.f32 %v2835_v12, %v1165_v36  ;;  %v3155_v25 = vpop.eup %2255 }
 0x1fa   : > { %2275 = vpow2.f32 %v1277_v13  ;;  %v1257_v50 = vmul.f32 1.442695, %v1212_v58  ;;  %v1208_v4 = vsub.f32 %v2846_v62, %v1165_v36  ;;  %v1334_v44 = vadd.f32 %v3155_v25, %v3151_v57 }
 0x1fb   : > { %v1267_v40 = vmul.f32 1.442695, %v1217_v11  ;;  %v1269_v21 = vmul.f32 1.442695, %v1218_v28  ;;  %2277 = vpow2.f32 %v1263_v2 }
 0x1fc   : > { %v1174_v45 = vpop.xlane.xlu0 %1173  ;;  %2279 = vpow2.f32 %v1265_v19  ;;  %v1159_v31 = vpop.xlane.xlu1 %1158  ;;  %v1249_v62 = vmul.f32 1.442695, %v1208_v4 }
 0x1fd   : > { %v1213_v48 = vsub.f32 %v2888_v14, %v1174_v45  ;;  %v1214_v63 = vsub.f32 %v2894_v3, %v1174_v45  ;;  %2281 = vpow2.f32 %v1267_v40  ;;  %v1247_v14 = vmul.f32 1.442695, %v1207_v1 }
 0x1fe   : > { %v3157_v43 = vpop.eup %2257  ;;  %2283 = vpow2.f32 %v1269_v21  ;;  %v1203_v23 = vsub.f32 %v2812_v15, %v1159_v31  ;;  %v1204_v8 = vsub.f32 %v2814_v18, %v1159_v31 }
 0x1ff   : > { %v1259_v10 = vmul.f32 1.442695, %v1213_v48  ;;  %v1261_v20 = vmul.f32 1.442695, %v1214_v63  ;;  %v3159_v51 = vpop.eup %2259  ;;  %2285 = vpow2.f32 %v1255_v33 }
 0x200   : > { %v1168_v12 = vpop.xlane.xlu0 %1167  ;;  %v3162_v61 = vpop.eup %2261  ;;  %2287 = vpow2.f32 %v1257_v50  ;;  %v1340_v55 = vadd.f32 %v3159_v51, %v3157_v43  ;;  %v1239_v19 = vmul.f32 1.442695, %v1203_v23 }
 0x201   : > { %v1209_v41 = vsub.f32 %v2854_v27, %v1168_v12  ;;  %v1210_v3 = vsub.f32 %v2857_v38, %v1168_v12  ;;  %v3167_v26 = vpop.eup %2263  ;;  %2289 = vpow2.f32 %v1259_v10  ;;  %v1153_v15 = vpop.xlane.xlu1 %1152 }
 0x202   : > { %v3170_v56 = vpop.eup %2265  ;;  %2291 = vpow2.f32 %v1261_v20  ;;  %1341 = vadd.xlane.f32.xlu0 %v1340_v55  ;;  %v1199_v21 = vsub.f32 %v2791_v30, %v1153_v15  ;;  %v1200_v48 = vsub.f32 %v2800_v37, %v1153_v15  ;;  %v1331_v50 = vadd.f32 %v3167_v26, %v3162_v61 }
 0x203   : > { %v1251_v54 = vmul.f32 1.442695, %v1209_v41  ;;  %v1253_v27 = vmul.f32 1.442695, %v1210_v3  ;;  %v3173_v13 = vpop.eup %2267  ;;  %2293 = vpow2.f32 %v1247_v14 }
 0x204   : > { %v1162_v9 = vpop.xlane.xlu0 %1161  ;;  %v3177_v2 = vpop.eup %2269  ;;  %2295 = vpow2.f32 %v1249_v62  ;;  %v1337_v18 = vadd.f32 %v3173_v13, %v3170_v56  ;;  %v1231_v37 = vmul.f32 1.442695, %v1199_v21  ;;  %v1233_v20 = vmul.f32 1.442695, %v1200_v48 }
 0x205   : > { %v1205_v38 = vsub.f32 %v2822_v29, %v1162_v9  ;;  %v1206_v49 = vsub.f32 %v2828_v46, %v1162_v9  ;;  %v3183_v11 = vpop.eup %2271  ;;  %2297 = vpow2.f32 %v1251_v54  ;;  %v1241_v29 = vmul.f32 1.442695, %v1204_v8 }
 0x206   : > { %v3185_v28 = vpop.eup %2273  ;;  %2299 = vpow2.f32 %v1253_v27  ;;  %1335 = vadd.xlane.f32.xlu0 %v1334_v44  ;;  %1338 = vadd.xlane.f32.xlu1 %v1337_v18  ;;  %v1325_v12 = vadd.f32 %v3183_v11, %v3177_v2 }
 0x207   : > { %v1243_v58 = vmul.f32 1.442695, %v1205_v38  ;;  %v1245_v36 = vmul.f32 1.442695, %v1206_v49  ;;  %v3187_v40 = vpop.eup %2275 }
 0x208   : > { %v1156_v46 = vpop.xlane.xlu0 %1155  ;;  %v3192_v1 = vpop.eup %2277  ;;  %v1328_v4 = vadd.f32 %v3187_v40, %v3185_v28 }
 0x209   : > { %2301 = vpow2.f32 %v1243_v58  ;;  %v1201_v45 = vsub.f32 %v2805_v52, %v1156_v46  ;;  %v1202_v33 = vsub.f32 %v2810_v5, %v1156_v46  ;;  %v3199_v63 = vpop.eup %2279 }
 0x20a   : > { %2303 = vpow2.f32 %v1245_v36  ;;  %v3201_v31 = vpop.eup %2281  ;;  %1332 = vadd.xlane.f32.xlu1 %v1331_v50  ;;  %1329 = vadd.xlane.f32.xlu0 %v1328_v4  ;;  %v1319_v23 = vadd.f32 %v3199_v63, %v3192_v1 }
 0x20b   : > { %2305 = vpow2.f32 %v1239_v19  ;;  %v1235_v30 = vmul.f32 1.442695, %v1201_v45  ;;  %v1237_v10 = vmul.f32 1.442695, %v1202_v33  ;;  %v3203_v52 = vpop.eup %2283 }
 0x20c   : > { %2307 = vpow2.f32 %v1241_v29  ;;  %v3205_v5 = vpop.eup %2285  ;;  %v1322_v14 = vadd.f32 %v3203_v52, %v3201_v31 }
 0x20d   : > { %2309 = vpow2.f32 %v1235_v30  ;;  %v3211_v41 = vpop.eup %2287 }
 0x20e   : > { %2311 = vpow2.f32 %v1237_v10  ;;  %v3213_v62 = vpop.eup %2289  ;;  %1326 = vadd.xlane.f32.xlu1 %v1325_v12  ;;  %1323 = vadd.xlane.f32.xlu0 %v1322_v14  ;;  %v1313_v49 = vadd.f32 %v3211_v41, %v3205_v5 }
 0x20f   : > { %v3215_v3 = vpop.eup %2291  ;;  %2313 = vpow2.f32 %v1231_v37 }
 0x210   : > { %v3217_v55 = vpop.eup %2293  ;;  %2315 = vpow2.f32 %v1233_v20  ;;  %v1316_v54 = vadd.f32 %v3215_v3, %v3213_v62 }
 0x211   : > { %v3223_v8 = vpop.eup %2295 }
 0x212   : > { %v3225_v27 = vpop.eup %2297  ;;  %1320 = vadd.xlane.f32.xlu1 %v1319_v23  ;;  %1317 = vadd.xlane.f32.xlu0 %v1316_v54  ;;  %v1307_v29 = vadd.f32 %v3223_v8, %v3217_v55 }
 0x213   : > { %v3227_v9 = vpop.eup %2299 }
 0x214   : > { %v1310_v15 = vadd.f32 %v3227_v9, %v3225_v27 }
 0x216   : > { %v3229_v38 = vpop.eup %2301  ;;  %1314 = vadd.xlane.f32.xlu1 %v1313_v49  ;;  %1311 = vadd.xlane.f32.xlu0 %v1310_v15 }
 0x217   : > { %v3235_v44 = vpop.eup %2303 }
 0x218   : > { %v3237_v18 = vpop.eup %2305  ;;  %v1304_v19 = vadd.f32 %v3235_v44, %v3229_v38 }
 0x219   : > { %v3241_v58 = vpop.eup %2307 }
 0x21a   : > { %v3243_v36 = vpop.eup %2309  ;;  %1308 = vadd.xlane.f32.xlu1 %v1307_v29  ;;  %1305 = vadd.xlane.f32.xlu0 %v1304_v19  ;;  %v1301_v33 = vadd.f32 %v3241_v58, %v3237_v18 }
 0x21b   : > { %v3247_v46 = vpop.eup %2311 }
 0x21c   : > { %v1298_v21 = vadd.f32 %v3247_v46, %v3243_v36  ;;  %v3251_v45 = vpop.eup %2313 }
 0x21d   : > { %v3255_v48 = vpop.eup %2315 }
 0x21e   : > { %1302 = vadd.xlane.f32.xlu1 %v1301_v33  ;;  %1299 = vadd.xlane.f32.xlu0 %v1298_v21  ;;  %v1295_v50 = vadd.f32 %v3255_v48, %v3251_v45 }
 0x222   : > { %1296 = vadd.xlane.f32.xlu1 %v1295_v50 }
 0x22c   : > { %v3259_v4 = vpop.f32.mrf.mxu0 }
 0x22e   : > { %v770_v30 = vpop.f32.mrf.mxu0 }
 0x22f   : > { %1455 = vmatprep.mubr.f32.mxu0 %v770_v30 }
 0x230   : > { %v3261_v10 = vpop.f32.mrf.mxu0 }
 0x232   : > { %v776_v37 = vpop.f32.mrf.mxu0 }
 0x233   : > { %1460 = vmatprep.mubr.f32.mxu1 %v776_v37 }
 0x28b   : > { %v1342_v20 = vpop.xlane.xlu0 %1341 }
 0x28c   : > { %2317 = vrcp.f32 %v1342_v20 }
 0x28f   : > { %v1339_v12 = vpop.xlane.xlu1 %1338  ;;  %v1336_v14 = vpop.xlane.xlu0 %1335 }
 0x290   : > { %2319 = vrcp.f32 %v1339_v12 }
 0x291   : > { %2321 = vrcp.f32 %v1336_v14 }
 0x293   : > { %v1333_v23 = vpop.xlane.xlu1 %1332  ;;  %v1330_v54 = vpop.xlane.xlu0 %1329 }
 0x294   : > { %2323 = vrcp.f32 %v1333_v23 }
 0x295   : > { %2325 = vrcp.f32 %v1330_v54 }
 0x297   : > { %v1327_v15 = vpop.xlane.xlu1 %1326  ;;  %v1324_v33 = vpop.xlane.xlu0 %1323 }
 0x298   : > { %2327 = vrcp.f32 %v1327_v15 }
 0x299   : > { %v2318_v49 = vpop.eup %2317  ;;  %2329 = vrcp.f32 %v1324_v33 }
 0x29a   : > { %v1390_v19 = vmul.f32 %v2318_v49, %v3159_v51  ;;  %v1389_v29 = vmul.f32 %v2318_v49, %v3157_v43  ;;  %v3268_v43 = vpop.f32.mrf.mxu0 }
 0x29b   : > { %v1321_v12 = vpop.xlane.xlu1 %1320 }
 0x29c   : > { %1391 = vmatprep.subr.mxu0 %v1390_v19  ;;  %2096 = vmatprep.subr.mxu1 %v1390_v19  ;;  %2331 = vrcp.f32 %v1321_v12 }
 0x29d   : > { %v2320_v21 = vpop.eup %2319  ;;  %1392 = vmatpush1.xpose.msra.mxu0 %v1389_v29  ;;  %2112 = vmatpush1.xpose.msra.mxu1 %v1389_v29 }
 0x29e   : > { %v2322_v50 = vpop.eup %2321  ;;  %v1388_v30 = vmul.f32 %v2320_v21, %v3173_v13  ;;  %v1387_v37 = vmul.f32 %v2320_v21, %v3170_v56  ;;  %v1318_v56 = vpop.xlane.xlu0 %1317 }
 0x29f   : > { %v1386_v20 = vmul.f32 %v2322_v50, %v3155_v25  ;;  %v1385_v14 = vmul.f32 %v2322_v50, %v3151_v57  ;;  %v3272_v25 = vpop.f32.mrf.mxu0  ;;  %2333 = vrcp.f32 %v1318_v56  ;;  %v1315_v19 = vpop.xlane.xlu1 %1314 }
 0x2a0   : > { %1393 = vmatprep.subr.mxu0 %v1388_v30  ;;  %2097 = vmatprep.subr.mxu1 %v1388_v30  ;;  %2335 = vrcp.f32 %v1315_v19 }
 0x2a1   : > { %v2324_v51 = vpop.eup %2323  ;;  %1394 = vmatpush1.xpose.msra.mxu0 %v1387_v37  ;;  %2113 = vmatpush1.xpose.msra.mxu1 %v1387_v37  ;;  %v3276_v57 = vpop.f32.mrf.mxu0 }
 0x2a2   : > { %1395 = vmatprep.subr.mxu0 %v1386_v20  ;;  %2098 = vmatprep.subr.mxu1 %v1386_v20  ;;  %v1384_v13 = vmul.f32 %v2324_v51, %v3167_v26  ;;  %v2326_v23 = vpop.eup %2325  ;;  %v1383_v54 = vmul.f32 %v2324_v51, %v3162_v61  ;;  %v1312_v33 = vpop.xlane.xlu0 %1311 }
 0x2a3   : > { %v1382_v49 = vmul.f32 %v2326_v23, %v3187_v40  ;;  %v1381_v26 = vmul.f32 %v2326_v23, %v3185_v28  ;;  %v3280_v61 = vpop.f32.mrf.mxu0  ;;  %2337 = vrcp.f32 %v1312_v33  ;;  %v1309_v37 = vpop.xlane.xlu1 %1308 }
 0x2a4   : > { %2339 = vrcp.f32 %v1309_v37 }
 0x2a5   : > { %1396 = vmatpush1.xpose.msra.mxu0 %v1385_v14  ;;  %2114 = vmatpush1.xpose.msra.mxu1 %v1385_v14  ;;  %v2328_v15 = vpop.eup %2327 }
 0x2a6   : > { %1397 = vmatprep.subr.mxu0 %v1384_v13  ;;  %2099 = vmatprep.subr.mxu1 %v1384_v13  ;;  %v1380_v29 = vmul.f32 %v2328_v15, %v3183_v11  ;;  %v2330_v21 = vpop.eup %2329  ;;  %v1379_v40 = vmul.f32 %v2328_v15, %v3177_v2  ;;  %v3284_v11 = vpop.f32.mrf.mxu0 }
 0x2a7   : > { %v1378_v50 = vmul.f32 %v2330_v21, %v3203_v52  ;;  %v1377_v28 = vmul.f32 %v2330_v21, %v3201_v31  ;;  %v1306_v12 = vpop.xlane.xlu0 %1305  ;;  %v1303_v23 = vpop.xlane.xlu1 %1302 }
 0x2a8   : > { %v3288_v2 = vpop.f32.mrf.mxu0  ;;  %2341 = vrcp.f32 %v1306_v12 }
 0x2a9   : > { %1398 = vmatpush1.xpose.msra.mxu0 %v1383_v54  ;;  %2115 = vmatpush1.xpose.msra.mxu1 %v1383_v54  ;;  %v2332_v30 = vpop.eup %2331  ;;  %2343 = vrcp.f32 %v1303_v23 }
 0x2aa   : > { %1399 = vmatprep.subr.mxu0 %v1382_v49  ;;  %2100 = vmatprep.subr.mxu1 %v1382_v49  ;;  %v1376_v20 = vmul.f32 %v2332_v30, %v3199_v63  ;;  %v1375_v52 = vmul.f32 %v2332_v30, %v3192_v1  ;;  %v3292_v63 = vpop.f32.mrf.mxu0 }
 0x2ab   : > { %v1300_v49 = vpop.xlane.xlu0 %1299 }
 0x2ac   : > { %v2334_v51 = vpop.eup %2333  ;;  %v3296_v1 = vpop.f32.mrf.mxu0  ;;  %2345 = vrcp.f32 %v1300_v49 }
 0x2ad   : > { %1400 = vmatpush1.xpose.msra.mxu0 %v1381_v26  ;;  %2116 = vmatpush1.xpose.msra.mxu1 %v1381_v26  ;;  %v1374_v14 = vmul.f32 %v2334_v51, %v3215_v3  ;;  %v2336_v13 = vpop.eup %2335  ;;  %v1373_v31 = vmul.f32 %v2334_v51, %v3213_v62  ;;  %v1297_v26 = vpop.xlane.xlu1 %1296 }
 0x2ae   : > { %1401 = vmatprep.subr.mxu0 %v1380_v29  ;;  %2101 = vmatprep.subr.mxu1 %v1380_v29  ;;  %v1372_v56 = vmul.f32 %v2336_v13, %v3211_v41  ;;  %v1371_v3 = vmul.f32 %v2336_v13, %v3205_v5  ;;  %v3300_v41 = vpop.f32.mrf.mxu0  ;;  %2347 = vrcp.f32 %v1297_v26  ;;  %v341_v13 = vld [vmem:[%s3588_s6] sm:$0xff] }
 0x2b0   : > { %v2338_v54 = vpop.eup %2337  ;;  %v3304_v5 = vpop.f32.mrf.mxu0 }
 0x2b1   : > { %1402 = vmatpush1.xpose.msra.mxu0 %v1379_v40  ;;  %2117 = vmatpush1.xpose.msra.mxu1 %v1379_v40  ;;  %v1370_v15 = vmul.f32 %v2338_v54, %v3227_v9  ;;  %v2340_v19 = vpop.eup %2339  ;;  %v1369_v62 = vmul.f32 %v2338_v54, %v3225_v27 }
 0x2b2   : > { %1403 = vmatprep.subr.mxu0 %v1378_v50  ;;  %2102 = vmatprep.subr.mxu1 %v1378_v50  ;;  %v1368_v29 = vmul.f32 %v2340_v19, %v3223_v8  ;;  %v1367_v9 = vmul.f32 %v2340_v19, %v3217_v55  ;;  %v3308_v27 = vpop.f32.mrf.mxu0 }
 0x2b4   : > { %v812_v37 = vpop.f32.mrf.mxu0 }
 0x2b5   : > { %1404 = vmatpush1.xpose.msra.mxu0 %v1377_v28  ;;  %2118 = vmatpush1.xpose.msra.mxu1 %v1377_v28  ;;  %v2342_v21 = vpop.eup %2341 }
 0x2b6   : > { %1405 = vmatprep.subr.mxu0 %v1376_v20  ;;  %2103 = vmatprep.subr.mxu1 %v1376_v20  ;;  %v1366_v33 = vmul.f32 %v2342_v21, %v3235_v44  ;;  %v2344_v40 = vpop.eup %2343  ;;  %v1365_v8 = vmul.f32 %v2342_v21, %v3229_v38  ;;  %v816_v20 = vpop.f32.mrf.mxu0 }
 0x2b7   : > { %v1364_v50 = vmul.f32 %v2344_v40, %v3241_v58  ;;  %v1363_v55 = vmul.f32 %v2344_v40, %v3237_v18 }
 0x2b8   : > { %v818_v51 = vpop.f32.mrf.mxu0 }
 0x2b9   : > { %1406 = vmatpush1.xpose.msra.mxu0 %v1375_v52  ;;  %2119 = vmatpush1.xpose.msra.mxu1 %v1375_v52  ;;  %v2346_v30 = vpop.eup %2345 }
 0x2ba   : > { %1407 = vmatprep.subr.mxu0 %v1374_v14  ;;  %2104 = vmatprep.subr.mxu1 %v1374_v14  ;;  %v1362_v44 = vmul.f32 %v2346_v30, %v3247_v46  ;;  %v1361_v38 = vmul.f32 %v2346_v30, %v3243_v36  ;;  %v822_v18 = vpop.f32.mrf.mxu0  ;;  %v3628_v14 = vmov 0.0  }
 0x2bb   : > { %v2348_v28 = vpop.eup %2347 }
 0x2bc   : > { %v1360_v58 = vmul.f32 %v2348_v28, %v3255_v48  ;;  %v1359_v12 = vmul.f32 %v2348_v28, %v3251_v45  ;;  %v824_v36 = vpop.f32.mrf.mxu0  ;;  %v3623_v45 = vld [vmem:[#allocation6_spill] sm:$0xff]  ;;  %v3624_v48 = vld [vmem:[#allocation9_spill] sm:$0xff] }
 0x2bd   : > { %1408 = vmatpush1.xpose.msra.mxu0 %v1373_v31  ;;  %2120 = vmatpush1.xpose.msra.mxu1 %v1373_v31 }
 0x2be   : > { %1409 = vmatprep.subr.mxu0 %v1372_v56  ;;  %2105 = vmatprep.subr.mxu1 %v1372_v56  ;;  %v342_v56 = vld [vmem:[%s3588_s6 + $0x8] sm:$0xff] }
 0x2c1   : > { %1410 = vmatpush1.xpose.msra.mxu0 %v1371_v3  ;;  %2121 = vmatpush1.xpose.msra.mxu1 %v1371_v3 }
 0x2c2   : > { %1411 = vmatprep.subr.mxu0 %v1370_v15  ;;  %2106 = vmatprep.subr.mxu1 %v1370_v15  ;;  %v343_v15 = vld [vmem:[%s3588_s6 + $0x10] sm:$0xff] }
 0x2c5   : > { %1412 = vmatpush1.xpose.msra.mxu0 %v1369_v62  ;;  %2122 = vmatpush1.xpose.msra.mxu1 %v1369_v62  ;;  %v344_v62 = vld [vmem:[%s3588_s6 + $0x18] sm:$0xff] }
 0x2c6   : > { %1413 = vmatprep.subr.mxu0 %v1368_v29  ;;  %2107 = vmatprep.subr.mxu1 %v1368_v29 }
 0x2c9   : > { %1414 = vmatpush1.xpose.msra.mxu0 %v1367_v9  ;;  %2123 = vmatpush1.xpose.msra.mxu1 %v1367_v9  ;;  %v345_v9 = vld [vmem:[%s3588_s6 + $0x20] sm:$0xff] }
 0x2ca   : > { %1415 = vmatprep.subr.mxu0 %v1366_v33  ;;  %2108 = vmatprep.subr.mxu1 %v1366_v33 }
 0x2cd   : > { %1416 = vmatpush1.xpose.msra.mxu0 %v1365_v8  ;;  %2124 = vmatpush1.xpose.msra.mxu1 %v1365_v8  ;;  %v346_v8 = vld [vmem:[%s3588_s6 + $0x28] sm:$0xff] }
 0x2ce   : > { %1417 = vmatprep.subr.mxu0 %v1364_v50  ;;  %2109 = vmatprep.subr.mxu1 %v1364_v50 }
 0x2d1   : > { %1418 = vmatpush1.xpose.msra.mxu0 %v1363_v55  ;;  %2125 = vmatpush1.xpose.msra.mxu1 %v1363_v55  ;;  %v347_v55 = vld [vmem:[%s3588_s6 + $0x30] sm:$0xff] }
 0x2d2   : > { %1419 = vmatprep.subr.mxu0 %v1362_v44  ;;  %2110 = vmatprep.subr.mxu1 %v1362_v44 }
 0x2d5   : > { %1420 = vmatpush1.xpose.msra.mxu0 %v1361_v38  ;;  %2126 = vmatpush1.xpose.msra.mxu1 %v1361_v38  ;;  %v348_v38 = vld [vmem:[%s3588_s6 + $0x38] sm:$0xff] }
 0x2d6   : > { %1421 = vmatprep.subr.mxu0 %v1360_v58  ;;  %2111 = vmatprep.subr.mxu1 %v1360_v58 }
 0x2d9   : > { %1422 = vmatpush1.xpose.msra.mxu0 %v1359_v12  ;;  %2127 = vmatpush1.xpose.msra.mxu1 %v1359_v12 }
 0x2da   : > { %1552 = vmatprep.subr.mxu1 %v3021_v60  ;;  %v828_v60 = vpop.f32.mrf.mxu0 }
 0x2dc   : > { %1456 = vmatmul.mubr.f32.vlgmr.msra.gmra.mxu0 %v3259_v4  ;;  %1461 = vmatmul.mubr.f32.vlgmr.msra.gmra.mxu1 %v3261_v10  ;;  %v3625_v4 = vld [vmem:[#allocation10_spill] sm:$0xff]  ;;  %v3626_v10 = vld [vmem:[#allocation11_spill] sm:$0xff] }
 0x2dd   : > { %1553 = vmatpush1.msra.mxu1 %v3005_v47  ;;  %1465 = vmatprep.mubr.f32.mxu1 %v3272_v25  ;;  %v830_v47 = vpop.f32.mrf.mxu0  ;;  %v3627_v25 = vld [vmem:[#allocation12_spill] sm:$0xff] }
 0x2de   : > { %1554 = vmatprep.subr.mxu1 %v3024_v17  ;;  %v3620_v17 = vld [vmem:[#allocation7_spill] sm:$0xff] }
 0x2df   : > { %1555 = vmatpush1.msra.mxu1 %v3008_v39  ;;  %v3615_v39 = vld [vmem:[#allocation17_spill] sm:$0xff] }
 0x2e0   : > { %1556 = vmatprep.subr.mxu1 %v3027_v42  ;;  %1466 = vmatmul.mubr.f32.gmra.mxu1 %v3268_v43  ;;  %v3621_v42 = vld [vmem:[#allocation5_spill] sm:$0xff] }
 0x2e1   : > { %1557 = vmatpush1.msra.mxu1 %v3011_v53  ;;  %1470 = vmatprep.mubr.f32.mxu1 %v3280_v61 }
 0x2e2   : > { %1558 = vmatprep.subr.mxu1 %v3030_v16  ;;  %v3622_v16 = vld [vmem:[#allocation8_spill] sm:$0xff] }
 0x2e3   : > { %1559 = vmatpush1.msra.mxu1 %v3014_v32  ;;  %v3619_v32 = vld [vmem:[#allocation20_spill] sm:$0xff] }
 0x2e4   : > { %1560 = vmatprep.subr.mxu1 %v2975_v7  ;;  %1471 = vmatmul.mubr.f32.gmra.mxu1 %v3276_v57  ;;  %v834_v7 = vpop.f32.mrf.mxu0 }
 0x2e5   : > { %1561 = vmatpush1.msra.mxu1 %v2959_v34  ;;  %1475 = vmatprep.mubr.f32.mxu1 %v3288_v2  ;;  %v3612_v34 = vld [vmem:[#allocation13_spill] sm:$0xff] }
 0x2e6   : > { %1562 = vmatprep.subr.mxu1 %v2978_v59  ;;  %v3613_v59 = vld [vmem:[#allocation16_spill] sm:$0xff] }
 0x2e7   : > { %1563 = vmatpush1.msra.mxu1 %v2962_v24  ;;  %v3614_v24 = vld [vmem:[#allocation14_spill] sm:$0xff] }
 0x2e8   : > { %1564 = vmatprep.subr.mxu1 %v2981_v35  ;;  %1476 = vmatmul.mubr.f32.gmra.mxu1 %v3284_v11  ;;  %v836_v35 = vpop.f32.mrf.mxu0 }
 0x2e9   : > { %1565 = vmatpush1.msra.mxu1 %v2965_v0  ;;  %1480 = vmatprep.mubr.f32.mxu1 %v3296_v1  ;;  %v3616_v0 = vld [vmem:[#allocation15_spill] sm:$0xff] }
 0x2ea   : > { %1566 = vmatprep.subr.mxu1 %v2984_v22  ;;  %v3617_v22 = vld [vmem:[#allocation18_spill] sm:$0xff]  ;;  %v840_v53 = vpop.f32.mrf.mxu0 }
 0x2eb   : > { %1567 = vmatpush1.msra.mxu1 %v2968_v6  ;;  %v3618_v6 = vld [vmem:[#allocation19_spill] sm:$0xff] }
 0x2ec   : > { %1568 = vmatprep.subr.mxu1 %v3612_v34  ;;  %1481 = vmatmul.mubr.f32.gmra.mxu1 %v3292_v63  ;;  %v842_v46 = vpop.f32.mrf.mxu0 }
 0x2ed   : > { %1569 = vmatpush1.msra.mxu1 %v3613_v59  ;;  %1485 = vmatprep.mubr.f32.mxu1 %v3304_v5 }
 0x2ee   : > { %1570 = vmatprep.subr.mxu1 %v3614_v24  ;;  %v846_v43 = vpop.f32.mrf.mxu0 }
 0x2ef   : > { %1571 = vmatpush1.msra.mxu1 %v3615_v39 }
 0x2f0   : > { %1572 = vmatprep.subr.mxu1 %v3616_v0  ;;  %1486 = vmatmul.mubr.f32.gmra.mxu1 %v3300_v41  ;;  %v848_v57 = vpop.f32.mrf.mxu0 }
 0x2f1   : > { %1573 = vmatpush1.msra.mxu1 %v3617_v22  ;;  %1490 = vmatprep.mubr.f32.mxu1 %v812_v37 }
 0x2f2   : > { %1574 = vmatprep.subr.mxu1 %v3618_v6  ;;  %v852_v61 = vpop.f32.mrf.mxu0  ;;  %v352_v6 = vld [vmem:[%s3588_s6 + $0x58] sm:$0xff] }
 0x2f3   : > { %1575 = vmatpush1.msra.mxu1 %v3619_v32 }
 0x2f4   : > { %1576 = vmatprep.subr.mxu1 %v3620_v17  ;;  %1491 = vmatmul.mubr.f32.gmra.mxu1 %v3308_v27  ;;  %v854_v11 = vpop.f32.mrf.mxu0 }
 0x2f5   : > { %1577 = vmatpush1.msra.mxu1 %v3621_v42  ;;  %1495 = vmatprep.mubr.f32.mxu1 %v818_v51  ;;  %v353_v42 = vld [vmem:[%s3588_s6 + $0x60] sm:$0xff] }
 0x2f6   : > { %1578 = vmatprep.subr.mxu1 %v3622_v16  ;;  %v858_v2 = vpop.f32.mrf.mxu0 }
 0x2f7   : > { %1579 = vmatpush1.msra.mxu1 %v3623_v45 }
 0x2f8   : > { %1580 = vmatprep.subr.mxu1 %v3624_v48  ;;  %1496 = vmatmul.mubr.f32.gmra.mxu1 %v816_v20  ;;  %v860_v52 = vpop.f32.mrf.mxu0  ;;  %v354_v48 = vld [vmem:[%s3588_s6 + $0x68] sm:$0xff] }
 0x2f9   : > { %1581 = vmatpush1.msra.mxu1 %v3625_v4  ;;  %1500 = vmatprep.mubr.f32.mxu1 %v824_v36 }
 0x2fa   : > { %1582 = vmatprep.subr.mxu1 %v3626_v10 }
 0x2fb   : > { %1583 = vmatpush1.msra.mxu1 %v3627_v25  ;;  %v355_v25 = vld [vmem:[%s3588_s6 + $0x70] sm:$0xff] }
 0x2fc   : > { %1501 = vmatmul.mubr.f32.gmra.mxu1 %v822_v18  ;;  %v349_v18 = vld [vmem:[%s3588_s6 + $0x40] sm:$0xff] }
 0x2fd   : > { %1505 = vmatprep.mubr.f32.mxu1 %v830_v47 }
 0x300   : > { %1506 = vmatmul.mubr.f32.gmra.mxu1 %v828_v60 }
 0x301   : > { %1510 = vmatprep.mubr.f32.mxu1 %v836_v35  ;;  %v351_v35 = vld [vmem:[%s3588_s6 + $0x50] sm:$0xff] }
 0x304   : > { %1511 = vmatmul.mubr.f32.gmra.mxu1 %v834_v7  ;;  %v350_v7 = vld [vmem:[%s3588_s6 + $0x48] sm:$0xff] }
 0x305   : > { %1515 = vmatprep.mubr.f32.mxu1 %v842_v46 }
 0x308   : > { %1516 = vmatmul.mubr.f32.gmra.mxu1 %v840_v53 }
 0x309   : > { %1520 = vmatprep.mubr.f32.mxu1 %v848_v57 }
 0x30c   : > { %1521 = vmatmul.mubr.f32.gmra.mxu1 %v846_v43 }
 0x30d   : > { %1525 = vmatprep.mubr.f32.mxu1 %v854_v11 }
 0x310   : > { %1526 = vmatmul.mubr.f32.gmra.mxu1 %v852_v61 }
 0x311   : > { %1530 = vmatprep.mubr.f32.mxu1 %v860_v52 }
 0x314   : > { %1531 = vmatmul.mubr.f32.gmra.mxu1 %v858_v2  ;;  %v356_v2 = vld [vmem:[%s3588_s6 + $0x78] sm:$0xff] }
 0x315   : > { %1616 = vmatprep.mubr.f32.mxu1 %v3628_v14 }
 0x39c   : > { %v1457_v23 = vpop.f32.mrf.mxu0  ;;  %v1462_v63 = vpop.f32.mrf.mxu1 }
 0x39d   : > { %v1536_v31 = vmul.f32 %v1457_v23, %v341_v13  ;;  %v1537_v3 = vmul.f32 %v1462_v63, %v342_v56  ;;  %v329_v23 = vld [vmem:[%s3585_s3] sm:$0xff]  ;;  %v330_v63 = vld [vmem:[%s3585_s3 + $0x8] sm:$0xff]  ;;  %v331_v56 = vld [vmem:[%s3585_s3 + $0x10] sm:$0xff] }
 0x39e   : > { %v1464_v54 = vpop.f32.mrf.mxu1  ;;  %v1459_v49 = vpop.f32.mrf.mxu0 }
 0x39f   : > { %1617 = vmatmul.mubr.f32.vlgmr.msra.gmra.mxu1 %v1536_v31  ;;  %v2414_v31 = vmov 0   ;;  %v332_v54 = vld [vmem:[%s3585_s3 + $0x18] sm:$0xff] }
 0x3a0   : > { %1622 = vmatprep.mubr.f32.mxu1 %v3628_v14  ;;  %v1467_v1 = vpop.f32.mrf.mxu1  ;;  %2171 = vset.pattern.permute.xlu0 %v2414_v31 }
 0x3a1   : > { %v1538_v41 = vmul.f32 %v1467_v1, %v343_v15  ;;  %2172 = vset.pattern.permute.xlu1 %v2414_v31  ;;  %1715 = vperm.xlu0 %2171, %v329_v23  }
 0x3a2   : > { %v1469_v19 = vpop.f32.mrf.mxu1  ;;  %1720 = vperm.xlu1 %2172, %v330_v63  }
 0x3a3   : > { %1623 = vmatmul.mubr.f32.gmra.mxu1 %v1537_v3 }
 0x3a4   : > { %1628 = vmatprep.mubr.f32.mxu1 %v3628_v14  ;;  %v1472_v26 = vpop.f32.mrf.mxu1 }
 0x3a5   : > { %v1539_v5 = vmul.f32 %v1472_v26, %v344_v62 }
 0x3a6   : > { %v1474_v29 = vpop.f32.mrf.mxu1  ;;  %1725 = vperm.xlu1 %2172, %v331_v56  }
 0x3a7   : > { %1629 = vmatmul.mubr.f32.gmra.mxu1 %v1538_v41 }
 0x3a8   : > { %1634 = vmatprep.mubr.f32.mxu1 %v3628_v14  ;;  %v1477_v21 = vpop.f32.mrf.mxu1 }
 0x3a9   : > { %v1540_v27 = vmul.f32 %v1477_v21, %v345_v9 }
 0x3aa   : > { %v1479_v33 = vpop.f32.mrf.mxu1  ;;  %1730 = vperm.xlu1 %2172, %v332_v54  }
 0x3ab   : > { %1635 = vmatmul.mubr.f32.gmra.mxu1 %v1539_v5 }
 0x3ac   : > { %1640 = vmatprep.mubr.f32.mxu1 %v3628_v14  ;;  %v1482_v40 = vpop.f32.mrf.mxu1 }
 0x3ad   : > { %v1541_v37 = vmul.f32 %v1482_v40, %v346_v8 }
 0x3ae   : > { %v1484_v50 = vpop.f32.mrf.mxu1 }
 0x3af   : > { %1641 = vmatmul.mubr.f32.gmra.mxu1 %v1540_v27 }
 0x3b0   : > { %1646 = vmatprep.mubr.f32.mxu1 %v3628_v14  ;;  %v1487_v30 = vpop.f32.mrf.mxu1 }
 0x3b1   : > { %v1542_v20 = vmul.f32 %v1487_v30, %v347_v55 }
 0x3b2   : > { %v1489_v44 = vpop.f32.mrf.mxu1 }
 0x3b3   : > { %1647 = vmatmul.mubr.f32.gmra.mxu1 %v1541_v37 }
 0x3b4   : > { %1652 = vmatprep.mubr.f32.mxu1 %v3628_v14  ;;  %v1492_v28 = vpop.f32.mrf.mxu1 }
 0x3b5   : > { %v1543_v12 = vmul.f32 %v1492_v28, %v348_v38 }
 0x3b6   : > { %v1494_v58 = vpop.f32.mrf.mxu1 }
 0x3b7   : > { %1653 = vmatmul.mubr.f32.gmra.mxu1 %v1542_v20 }
 0x3b8   : > { %1658 = vmatprep.mubr.f32.mxu1 %v3628_v14  ;;  %v1497_v51 = vpop.f32.mrf.mxu1 }
 0x3b9   : > { %v1544_v47 = vmul.f32 %v1497_v51, %v349_v18 }
 0x3ba   : > { %v1499_v36 = vpop.f32.mrf.mxu1 }
 0x3bb   : > { %1659 = vmatmul.mubr.f32.gmra.mxu1 %v1543_v12 }
 0x3bc   : > { %1664 = vmatprep.mubr.f32.mxu1 %v3628_v14  ;;  %v1502_v60 = vpop.f32.mrf.mxu1 }
 0x3bd   : > { %v1545_v24 = vmul.f32 %v1502_v60, %v350_v7 }
 0x3be   : > { %v1504_v34 = vpop.f32.mrf.mxu1 }
 0x3bf   : > { %1665 = vmatmul.mubr.f32.gmra.mxu1 %v1544_v47  ;;  %v325_v34 = vld [vmem:[%s3584_s2] sm:$0xff] }
 0x3c0   : > { %1670 = vmatprep.mubr.f32.mxu1 %v3628_v14  ;;  %v1507_v59 = vpop.f32.mrf.mxu1 }
 0x3c1   : > { %v1546_v22 = vmul.f32 %v1507_v59, %v351_v35  ;;  %v326_v59 = vld [vmem:[%s3584_s2 + $0x8] sm:$0xff]  ;;  %v328_v35 = vld [vmem:[%s3584_s2 + $0x18] sm:$0xff] }
 0x3c2   : > { %v1509_v39 = vpop.f32.mrf.mxu1 }
 0x3c3   : > { %1671 = vmatmul.mubr.f32.gmra.mxu1 %v1545_v24  ;;  %v327_v24 = vld [vmem:[%s3584_s2 + $0x10] sm:$0xff] }
 0x3c4   : > { %1676 = vmatprep.mubr.f32.mxu1 %v3628_v14  ;;  %v1512_v0 = vpop.f32.mrf.mxu1 }
 0x3c5   : > { %v1547_v17 = vmul.f32 %v1512_v0, %v352_v6 }
 0x3c6   : > { %v1514_v53 = vpop.f32.mrf.mxu1 }
 0x3c7   : > { %1677 = vmatmul.mubr.f32.gmra.mxu1 %v1546_v22 }
 0x3c8   : > { %1682 = vmatprep.mubr.f32.mxu1 %v3628_v14  ;;  %v1517_v32 = vpop.f32.mrf.mxu1 }
 0x3c9   : > { %v1548_v45 = vmul.f32 %v1517_v32, %v353_v42 }
 0x3ca   : > { %v1519_v16 = vpop.f32.mrf.mxu1 }
 0x3cb   : > { %1683 = vmatmul.mubr.f32.gmra.mxu1 %v1547_v17 }
 0x3cc   : > { %1688 = vmatprep.mubr.f32.mxu1 %v3628_v14  ;;  %v1522_v46 = vpop.f32.mrf.mxu1 }
 0x3cd   : > { %v1549_v43 = vmul.f32 %v1522_v46, %v354_v48 }
 0x3ce   : > { %v1524_v4 = vpop.f32.mrf.mxu1 }
 0x3cf   : > { %1689 = vmatmul.mubr.f32.gmra.mxu1 %v1548_v45 }
 0x3d0   : > { %1694 = vmatprep.mubr.f32.mxu1 %v3628_v14  ;;  %v1527_v10 = vpop.f32.mrf.mxu1 }
 0x3d1   : > { %v1550_v11 = vmul.f32 %v1527_v10, %v355_v25 }
 0x3d2   : > { %v1529_v57 = vpop.f32.mrf.mxu1 }
 0x3d3   : > { %1695 = vmatmul.mubr.f32.gmra.mxu1 %v1549_v43 }
 0x3d4   : > { %1700 = vmatprep.mubr.f32.mxu1 %v3628_v14  ;;  %v1532_v61 = vpop.f32.mrf.mxu1 }
 0x3d5   : > { %v1551_v13 = vmul.f32 %v1532_v61, %v356_v2 }
 0x3d6   : > { %v1534_v52 = vpop.f32.mrf.mxu1 }
 0x3d7   : > { %1701 = vmatmul.mubr.f32.gmra.mxu1 %v1550_v11 }
 0x3d8   : > { %1706 = vmatprep.mubr.f32.mxu1 %v3628_v14 }
 0x3db   : > { %1707 = vmatmul.mubr.f32.gmra.mxu1 %v1551_v13 }
 0x3dc   : > { %1797 = vmatprep.mubr.f32.mxu1 %v3628_v14 }
 0x41c   : > { %v1716_v39 = vpop.permute.xlu0 %1715 }
 0x41d   : > { %v1721_v53 = vpop.permute.xlu1 %1720 }
 0x421   : > { %v1726_v10 = vpop.permute.xlu1 %1725 }
 0x45f   : > { %v3439_v49 = vpop.f32.mrf.mxu1 }
 0x461   : > { %v1620_v1 = vpop.f32.mrf.mxu1 }
 0x463   : > { %v1624_v3 = vpop.f32.mrf.mxu1 }
 0x465   : > { %v1626_v15 = vpop.f32.mrf.mxu1 }
 0x467   : > { %v1630_v19 = vpop.f32.mrf.mxu1 }
 0x469   : > { %v1632_v26 = vpop.f32.mrf.mxu1 }
 0x46b   : > { %v1636_v41 = vpop.f32.mrf.mxu1 }
 0x46d   : > { %v1638_v62 = vpop.f32.mrf.mxu1 }
 0x46f   : > { %v1642_v29 = vpop.f32.mrf.mxu1 }
 0x471   : > { %v1644_v21 = vpop.f32.mrf.mxu1 }
 0x473   : > { %v1648_v5 = vpop.f32.mrf.mxu1 }
 0x475   : > { %v1650_v9 = vpop.f32.mrf.mxu1 }
 0x477   : > { %v1654_v33 = vpop.f32.mrf.mxu1 }
 0x479   : > { %v1656_v40 = vpop.f32.mrf.mxu1 }
 0x47b   : > { %v1660_v27 = vpop.f32.mrf.mxu1 }
 0x47d   : > { %v1662_v8 = vpop.f32.mrf.mxu1 }
 0x47f   : > { %v1666_v50 = vpop.f32.mrf.mxu1 }
 0x481   : > { %v1668_v30 = vpop.f32.mrf.mxu1 }
 0x483   : > { %v1672_v37 = vpop.f32.mrf.mxu1 }
 0x485   : > { %v1674_v55 = vpop.f32.mrf.mxu1 }
 0x487   : > { %v1678_v44 = vpop.f32.mrf.mxu1 }
 0x489   : > { %v1680_v28 = vpop.f32.mrf.mxu1 }
 0x48b   : > { %v1684_v20 = vpop.f32.mrf.mxu1 }
 0x48d   : > { %v1686_v38 = vpop.f32.mrf.mxu1 }
 0x48f   : > { %v1690_v58 = vpop.f32.mrf.mxu1 }
 0x491   : > { %v1692_v51 = vpop.f32.mrf.mxu1 }
 0x493   : > { %v1696_v12 = vpop.f32.mrf.mxu1 }
 0x495   : > { %v1698_v18 = vpop.f32.mrf.mxu1 }
 0x497   : > { %v1702_v36 = vpop.f32.mrf.mxu1 }
 0x499   : > { %v1704_v60 = vpop.f32.mrf.mxu1 }
 0x49b   : > { %v1708_v47 = vpop.f32.mrf.mxu1 }
 0x49d   : > { %v1710_v7 = vpop.f32.mrf.mxu1 }
 0x49e   : > { %1733 = vmatprep.subr.mxu1 %v1710_v7 }
 0x49f   : > { %1734 = vmatpush1.msra.mxu1 %v1708_v47 }
 0x4a0   : > { %1735 = vmatprep.subr.mxu1 %v1704_v60 }
 0x4a1   : > { %1736 = vmatpush1.msra.mxu1 %v1702_v36 }
 0x4a2   : > { %1737 = vmatprep.subr.mxu1 %v1698_v18 }
 0x4a3   : > { %1738 = vmatpush1.msra.mxu1 %v1696_v12 }
 0x4a4   : > { %1739 = vmatprep.subr.mxu1 %v1692_v51 }
 0x4a5   : > { %1740 = vmatpush1.msra.mxu1 %v1690_v58 }
 0x4a6   : > { %1741 = vmatprep.subr.mxu1 %v1686_v38 }
 0x4a7   : > { %1742 = vmatpush1.msra.mxu1 %v1684_v20 }
 0x4a8   : > { %1743 = vmatprep.subr.mxu1 %v1680_v28 }
 0x4a9   : > { %1744 = vmatpush1.msra.mxu1 %v1678_v44 }
 0x4aa   : > { %1745 = vmatprep.subr.mxu1 %v1674_v55 }
 0x4ab   : > { %1746 = vmatpush1.msra.mxu1 %v1672_v37 }
 0x4ac   : > { %1747 = vmatprep.subr.mxu1 %v1668_v30 }
 0x4ad   : > { %1748 = vmatpush1.msra.mxu1 %v1666_v50 }
 0x4ae   : > { %1749 = vmatprep.subr.mxu1 %v1662_v8  ;;  %v339_v8 = vld [vmem:[%s3587_s5 + $0x10] sm:$0xff] }
 0x4af   : > { %1750 = vmatpush1.msra.mxu1 %v1660_v27  ;;  %v337_v27 = vld [vmem:[%s3587_s5] sm:$0xff] }
 0x4b0   : > { %1751 = vmatprep.subr.mxu1 %v1656_v40  ;;  %v340_v40 = vld [vmem:[%s3587_s5 + $0x18] sm:$0xff] }
 0x4b1   : > { %1752 = vmatpush1.msra.mxu1 %v1654_v33  ;;  %v335_v33 = vld [vmem:[%s3586_s4 + $0x10] sm:$0xff] }
 0x4b2   : > { %1753 = vmatprep.subr.mxu1 %v1650_v9  ;;  %v338_v9 = vld [vmem:[%s3587_s5 + $0x8] sm:$0xff] }
 0x4b3   : > { %1754 = vmatpush1.msra.mxu1 %v1648_v5  ;;  %v334_v5 = vld [vmem:[%s3586_s4 + $0x8] sm:$0xff] }
 0x4b4   : > { %1755 = vmatprep.subr.mxu1 %v1644_v21  ;;  %v336_v21 = vld [vmem:[%s3586_s4 + $0x18] sm:$0xff] }
 0x4b5   : > { %1756 = vmatpush1.msra.mxu1 %v1642_v29  ;;  %v333_v29 = vld [vmem:[%s3586_s4] sm:$0xff] }
 0x4b6   : > { %1757 = vmatprep.subr.mxu1 %v1638_v62 }
 0x4b7   : > { %1758 = vmatpush1.msra.mxu1 %v1636_v41 }
 0x4b8   : > { %1759 = vmatprep.subr.mxu1 %v1632_v26 }
 0x4b9   : > { %1760 = vmatpush1.msra.mxu1 %v1630_v19 }
 0x4ba   : > { %1761 = vmatprep.subr.mxu1 %v1626_v15 }
 0x4bb   : > { %1762 = vmatpush1.msra.mxu1 %v1624_v3 }
 0x4bc   : > { %1763 = vmatprep.subr.mxu1 %v1620_v1 }
 0x4bd   : > { %1764 = vmatpush1.msra.mxu1 %v3439_v49  ;;  %v1731_v49 = vpop.permute.xlu1 %1730 }
 0x4be   : > { %1798 = vmatmul.mubr.f32.vlgmr.msra.gmra.mxu1 %v325_v34 }
 0x4bf   : > { %1803 = vmatprep.mubr.f32.mxu1 %v3628_v14 }
 0x4c2   : > { %1804 = vmatmul.mubr.f32.gmra.mxu1 %v326_v59 }
 0x4c3   : > { %1809 = vmatprep.mubr.f32.mxu1 %v3628_v14 }
 0x4c6   : > { %1810 = vmatmul.mubr.f32.gmra.mxu1 %v327_v24 }
 0x4c7   : > { %1815 = vmatprep.mubr.f32.mxu1 %v3628_v14 }
 0x4ca   : > { %1816 = vmatmul.mubr.f32.gmra.mxu1 %v328_v35 }
 0x57e   : > { %v1799_v0 = vpop.f32.mrf.mxu1 }
 0x57f   : > { %v3457_v22 = vadd.f32 %v1799_v0, %v1716_v39 }
 0x580   : > { %v1801_v6 = vpop.f32.mrf.mxu1 }
 0x581   : > { %v3459_v32 = vadd.f32 %v1801_v6, %v1716_v39  ;;  %v1844_v45 = vmul.f32 %v3457_v22, %v3457_v22 }
 0x582   : > { %v1805_v17 = vpop.f32.mrf.mxu1 }
 0x583   : > { %v3461_v42 = vadd.f32 %v1805_v17, %v1721_v53  ;;  %v1822_v16 = vadd.f32 %v3459_v32, %v3457_v22  ;;  %v1845_v14 = vmul.f32 %v3459_v32, %v3459_v32 }
 0x584   : > { %v1807_v46 = vpop.f32.mrf.mxu1 }
 0x585   : > { %v3469_v48 = vadd.f32 %v1807_v46, %v1721_v53  ;;  %1823 = vadd.xlane.f32.xlu1 %v1822_v16  ;;  %v1852_v43 = vadd.f32 %v1845_v14, %v1844_v45  ;;  %v1846_v61 = vmul.f32 %v3461_v42, %v3461_v42 }
 0x586   : > { %v1811_v4 = vpop.f32.mrf.mxu1 }
 0x587   : > { %v3471_v25 = vadd.f32 %v1811_v4, %v1726_v10  ;;  %v1825_v57 = vadd.f32 %v3469_v48, %v3461_v42  ;;  %v1847_v11 = vmul.f32 %v3469_v48, %v3469_v48 }
 0x588   : > { %v1813_v2 = vpop.f32.mrf.mxu1 }
 0x589   : > { %v3479_v52 = vadd.f32 %v1813_v2, %v1726_v10  ;;  %1853 = vadd.xlane.f32.xlu1 %v1852_v43  ;;  %1826 = vadd.xlane.f32.xlu0 %v1825_v57  ;;  %v1855_v23 = vadd.f32 %v1847_v11, %v1846_v61  ;;  %v1848_v63 = vmul.f32 %v3471_v25, %v3471_v25 }
 0x58a   : > { %v1817_v13 = vpop.f32.mrf.mxu1 }
 0x58b   : > { %v1849_v31 = vmul.f32 %v3479_v52, %v3479_v52  ;;  %v1828_v3 = vadd.f32 %v3479_v52, %v3471_v25  ;;  %v3489_v15 = vadd.f32 %v1817_v13, %v1731_v49 }
 0x58c   : > { %v1819_v56 = vpop.f32.mrf.mxu1 }
 0x58d   : > { %1856 = vadd.xlane.f32.xlu1 %v1855_v23  ;;  %v1858_v54 = vadd.f32 %v1849_v31, %v1848_v63  ;;  %v3485_v1 = vadd.f32 %v1819_v56, %v1731_v49  ;;  %v1850_v41 = vmul.f32 %v3489_v15, %v3489_v15 }
 0x58f   : > { %1859 = vadd.xlane.f32.xlu0 %v1858_v54  ;;  %v1831_v19 = vadd.f32 %v3485_v1, %v3489_v15  ;;  %v1851_v26 = vmul.f32 %v3485_v1, %v3485_v1 }
 0x591   : > { %1829 = vadd.xlane.f32.xlu1 %v1828_v3  ;;  %v1861_v62 = vadd.f32 %v1851_v26, %v1850_v41 }
 0x595   : > { %1832 = vadd.xlane.f32.xlu1 %v1831_v19 }
 0x599   : > { %1862 = vadd.xlane.f32.xlu1 %v1861_v62 }
 0x5a5   : > { %1896 = vperm.xlu0 %2171, %v333_v29  }
 0x5a9   : > { %1911 = vperm.xlu0 %2171, %v336_v21  }
 0x5aa   : > { %1901 = vperm.xlu1 %2172, %v334_v5  }
 0x5ad   : > { %1929 = vperm.xlu0 %2171, %v338_v9  }
 0x5ae   : > { %1906 = vperm.xlu1 %2172, %v335_v33  }
 0x5b1   : > { %1939 = vperm.xlu0 %2171, %v340_v40  }
 0x5b2   : > { %1924 = vperm.xlu1 %2172, %v337_v27  }
 0x5b6   : > { %1934 = vperm.xlu1 %2172, %v339_v8  }
 0x60e   : > { %v1824_v50 = vpop.xlane.xlu1 %1823 }
 0x612   : > { %v1854_v30 = vpop.xlane.xlu1 %1853  ;;  %v1827_v55 = vpop.xlane.xlu0 %1826 }
 0x613   : > { %v1834_v28 = vadd.f32 %v1827_v55, %v1824_v50 }
 0x616   : > { %v1857_v37 = vpop.xlane.xlu1 %1856 }
 0x617   : > { %v1864_v20 = vadd.f32 %v1857_v37, %v1854_v30 }
 0x618   : > { %v1860_v58 = vpop.xlane.xlu0 %1859 }
 0x619   : > { %v1865_v18 = vadd.f32 %v1864_v20, %v1860_v58 }
 0x61a   : > { %v1830_v44 = vpop.xlane.xlu1 %1829 }
 0x61b   : > { %v1835_v38 = vadd.f32 %v1834_v28, %v1830_v44 }
 0x61e   : > { %v1833_v51 = vpop.xlane.xlu1 %1832 }
 0x61f   : > { %v1836_v12 = vadd.f32 %v1835_v38, %v1833_v51 }
 0x620   : > { %v1897_v43 = vpop.permute.xlu0 %1896 }
 0x621   : > { %v1837_v36 = vrot.slane %v1836_v12, 4 }
 0x622   : > { %v1863_v60 = vpop.xlane.xlu1 %1862 }
 0x623   : > { %v1838_v47 = vadd.f32 %v1837_v36, %v1836_v12  ;;  %v1866_v7 = vadd.f32 %v1865_v18, %v1863_v60 }
 0x624   : > { %v1912_v61 = vpop.permute.xlu0 %1911 }
 0x625   : > { %v1839_v34 = vrot.slane %v1838_v47, 2  ;;  %v1867_v59 = vrot.slane %v1866_v7, 4 }
 0x626   : > { %v1902_v57 = vpop.permute.xlu1 %1901 }
 0x627   : > { %v1840_v24 = vadd.f32 %v1839_v34, %v1838_v47  ;;  %v1868_v35 = vadd.f32 %v1867_v59, %v1866_v7 }
 0x628   : > { %v1930_v2 = vpop.permute.xlu0 %1929 }
 0x629   : > { %v1841_v39 = vrot.slane %v1840_v24, 1  ;;  %v1869_v0 = vrot.slane %v1868_v35, 2 }
 0x62a   : > { %v1907_v11 = vpop.permute.xlu1 %1906 }
 0x62b   : > { %v1842_v6 = vadd.f32 %v1841_v39, %v1840_v24  ;;  %v1870_v53 = vadd.f32 %v1869_v0, %v1868_v35 }
 0x62d   : > { %v1843_v17 = vmul.f32 0.00012207031, %v1842_v6  ;;  %v1871_v16 = vrot.slane %v1870_v53, 1 }
 0x62e   : > { %v1925_v56 = vpop.permute.xlu1 %1924 }
 0x62f   : > { %v1872_v14 = vadd.f32 %v1871_v16, %v1870_v53  ;;  %v1874_v46 = vmul.f32 %v1843_v17, %v1843_v17  ;;  %v1882_v13 = vsub.f32 %v3489_v15, %v1843_v17  ;;  %v1883_v23 = vsub.f32 %v3485_v1, %v1843_v17 }
 0x630   : > { %v1878_v63 = vsub.f32 %v3461_v42, %v1843_v17  ;;  %v1879_v31 = vsub.f32 %v3469_v48, %v1843_v17  ;;  %v1880_v49 = vsub.f32 %v3471_v25, %v1843_v17  ;;  %v1881_v3 = vsub.f32 %v3479_v52, %v1843_v17 }
 0x631   : > { %v1873_v45 = vmul.f32 0.00012207031, %v1872_v14  ;;  %v1876_v19 = vsub.f32 %v3457_v22, %v1843_v17  ;;  %v1877_v26 = vsub.f32 %v3459_v32, %v1843_v17  ;;  %v1940_v22 = vpop.permute.xlu0 %1939 }
 0x632   : > { %v1935_v55 = vpop.permute.xlu1 %1934 }
 0x633   : > { %v1875_v4 = vsub.f32 %v1873_v45, %v1874_v46 }
 0x635   : > { %v1884_v10 = vadd.f32 1e-05, %v1875_v4 }
 0x637   : > { %2349 = vrsqrt.f32 %v1884_v10 }
 0x644   : > { %v2350_v54 = vpop.eup %2349 }
 0x645   : > { %v1892_v41 = vmul.f32 %v2350_v54, %v1882_v13  ;;  %v1893_v62 = vmul.f32 %v2350_v54, %v1883_v23  ;;  %v1888_v15 = vmul.f32 %v2350_v54, %v1878_v63  ;;  %v1889_v29 = vmul.f32 %v2350_v54, %v1879_v31 }
 0x646   : > { %v1890_v1 = vmul.f32 %v2350_v54, %v1880_v49  ;;  %v1891_v21 = vmul.f32 %v2350_v54, %v1881_v3  ;;  %v1886_v42 = vmul.f32 %v2350_v54, %v1876_v19  ;;  %v1887_v5 = vmul.f32 %v2350_v54, %v1877_v26 }
 0x647   : > { %v1920_v48 = vmul.f32 %v1912_v61, %v1892_v41  ;;  %v1921_v9 = vmul.f32 %v1912_v61, %v1893_v62  ;;  %v1916_v25 = vmul.f32 %v1902_v57, %v1888_v15  ;;  %v1917_v33 = vmul.f32 %v1902_v57, %v1889_v29 }
 0x648   : > { %v1918_v52 = vmul.f32 %v1907_v11, %v1890_v1  ;;  %v1919_v40 = vmul.f32 %v1907_v11, %v1891_v21  ;;  %v1914_v27 = vmul.f32 %v1897_v43, %v1886_v42  ;;  %v1915_v32 = vmul.f32 %v1897_v43, %v1887_v5 }
 0x649   : > { %v1944_v8 = vadd.f32 %v1930_v2, %v1916_v25  ;;  %v1945_v50 = vadd.f32 %v1930_v2, %v1917_v33  ;;  %v1948_v30 = vadd.f32 %v1940_v22, %v1920_v48  ;;  %v1949_v37 = vadd.f32 %v1940_v22, %v1921_v9 }
 0x64a   : > { %v1942_v44 = vadd.f32 %v1925_v56, %v1914_v27  ;;  %v1943_v28 = vadd.f32 %v1925_v56, %v1915_v32  ;;  %v1946_v20 = vadd.f32 %v1935_v55, %v1918_v52  ;;  %v1947_v38 = vadd.f32 %v1935_v55, %v1919_v40 }
 0x64b   : > { %1952 = vst [vmem:[%s271_s13 + $0x10] sm:$0xff] %v1944_v8  ;;  %1953 = vst [vmem:[%s271_s13 + $0x18] sm:$0xff] %v1945_v50 }
 0x64c   : > { %1956 = vst [vmem:[%s271_s13 + $0x30] sm:$0xff] %v1948_v30  ;;  %1957 = vst [vmem:[%s271_s13 + $0x38] sm:$0xff] %v1949_v37 }
 0x64d   : > { %1950 = vst [vmem:[%s271_s13] sm:$0xff] %v1942_v44  ;;  %1951 = vst [vmem:[%s271_s13 + $0x8] sm:$0xff] %v1943_v28 }
 0x64e   : > { %1954 = vst [vmem:[%s271_s13 + $0x20] sm:$0xff] %v1946_v20  ;;  %1955 = vst [vmem:[%s271_s13 + $0x28] sm:$0xff] %v1947_v38 }
 0x64f   : > { %2364 = shalt.err (!%p2361_p3)
}
 0x650   : > { %s2365_s22 = scalar_lea.hbm %s3536_s28, 1024  ;;  %s2369_s8 = scalar_lea.hbm %s3589_s7, 2048 }
 0x651   : > { %p2366_p4 = scmp.ne.s32.totalorder %s3536_s28, %s2365_s22  ;;  %p2370_p9 = scmp.lt.s32.totalorder %s3536_s28, %s3589_s7 }
 0x652   : > { %p2371_p10 = scmp.lt.s32.totalorder %s2369_s8, %s2365_s22 }
 0x653   : > { %p2367_p7 = pnand %p2366_p4, %p2496_p5 }
 0x654   : > { %p2372_p11 = por %p2371_p10, %p2370_p9 }
 0x655   : > { %p2368_p8 = pneg %p2367_p7 }
 0x657   : > { %p2373_p12 = pnand %p2372_p11, %p2368_p8 }
 0x659   : > { %2376 = shalt.err (!%p2373_p12)
}
 0x65a   : > { %s2416_s15 = smov 256   ;;  %s2417_s16 = smov 16  }
 0x65b   : > { %2128 = dma.vmem_to_hbm [thread:$0]  (%p2496_p5), %s3538_s14, 1024, %s3536_s28, %s3542_s17, %s2416_s15, %s2416_s15, %s2417_s16  }
 0x65c PF: > { %p2134_p13 = scmp.ge.s32.totalorder %s2411_s27, 2  ;;  %s1987_s18 = sand.u32 1, %s2399_s24  }
 0x65d   : > { %s1988_s19 = scalar_lea.sflag [#allocation3], %s1987_s18 }
 0x65e   : > { %p2131_p0 = pnand %p2134_p13, %p2500_p6 }
 0x660   : > { %p2132_p1 = pneg %p2131_p0 }
 0x662   : > { %2394 = dma.done.wait (%p2132_p1), %s1988_s19, 1024  }
 0x663   : > { %2396 = vsyncadd (%p2132_p1), %s1988_s19, 4294966272  ;;  %p17_p2 = scmp.ge.s32.totalorder %s2483_s30, 4   ;;  %s3629_s24 = smov %s2403_s25 }
 0x664   : > { %s3630_s25 = smov %s2407_s26  ;;  %s3631_s26 = smov %s2494_s10 }
 0x665   : > { %s3632_s27 = smov %s2483_s30  ;;  %19 = sbr.rel (!%p17_p2) target bundleno = 3 (0x3), region = 83 }
 0x66a   :  { %1993 = vsyncpa [#allocation3], 1 }
 0x66b   :  { %1995 = vsyncpa [#allocation3 + $0x1], 1 }

</bundles_post_ra>
